<compile_context>
chip_gen: v6e
topology: v6e:2x2x1
jax: 0.10.0
libtpu: 0.0.40
codegen_flags: <defaults>
</compile_context>

<pallas_src>
import functools
import math

import jax
import jax.numpy as jnp
from jax.experimental import pallas as pl
from jax.experimental.pallas import tpu as pltpu


# ----------------------------- tiling helpers ------------------------------

def _pick_tile(dim, target, align):
    """Largest tile <= target that is a multiple of `align` and divides `dim`.
    Falls back to the full dim (always legal for BlockSpec) if none exists."""
    if dim <= target:
        return dim
    t = (min(target, dim) // align) * align
    while t >= align:
        if dim % t == 0:
            return t
        t -= align
    return dim


# ----------------------------- Pallas kernels ------------------------------

def _linear_kernel(x_ref, w_ref, b_ref, o_ref, acc_ref):
    k = pl.program_id(2)

    @pl.when(k == 0)
    def _():
        acc_ref[...] = jnp.zeros_like(acc_ref)

    acc_ref[...] += jnp.dot(
        x_ref[...].astype(jnp.bfloat16), w_ref[...],
        preferred_element_type=jnp.float32)

    @pl.when(k == pl.num_programs(2) - 1)
    def _():
        o_ref[...] = acc_ref[...] + b_ref[...]


def linear(x2d, w, b, *, tm_t=256, tn_t=256, tk_t=512):
    # x2d: (M, K) f32, w: (K, N) bf16, b: (1, N) f32  ->  (M, N) f32
    M, K = x2d.shape
    N = w.shape[1]
    tm = _pick_tile(M, tm_t, 8)
    tn = _pick_tile(N, tn_t, 128)
    tk = _pick_tile(K, tk_t, 128)
    grid = (M // tm, N // tn, K // tk)
    ce = pl.CostEstimate(
        flops=2 * M * N * K,
        transcendentals=0,
        bytes_accessed=int(M * K * x2d.dtype.itemsize + K * N * w.dtype.itemsize
                           + N * 4 + M * N * 4),
    )
    return pl.pallas_call(
        _linear_kernel,
        grid_spec=pltpu.PrefetchScalarGridSpec(
            num_scalar_prefetch=0,
            grid=grid,
            in_specs=[
                pl.BlockSpec((tm, tk), lambda i, j, k: (i, k)),
                pl.BlockSpec((tk, tn), lambda i, j, k: (k, j)),
                pl.BlockSpec((1, tn), lambda i, j, k: (0, j)),
            ],
            out_specs=pl.BlockSpec((tm, tn), lambda i, j, k: (i, j)),
            scratch_shapes=[pltpu.VMEM((tm, tn), jnp.float32)],
        ),
        out_shape=jax.ShapeDtypeStruct((M, N), jnp.float32),
        compiler_params=pltpu.CompilerParams(
            dimension_semantics=("parallel", "parallel", "arbitrary")),
        cost_estimate=ce,
    )(x2d, w, b)


def _layer_norm_kernel(x_ref, g_ref, b_ref, o_ref, *, eps):
    x = x_ref[...]
    mean = jnp.mean(x, axis=-1, keepdims=True)
    var = jnp.mean(jnp.square(x - mean), axis=-1, keepdims=True)
    o_ref[...] = (x - mean) * jax.lax.rsqrt(var + eps) * g_ref[...] + b_ref[...]


def layer_norm(x, g, b, eps):
    shp = x.shape
    D = shp[-1]
    x2 = x.reshape(-1, D)
    M = x2.shape[0]
    tm = _pick_tile(M, 256, 8)
    out = pl.pallas_call(
        functools.partial(_layer_norm_kernel, eps=eps),
        grid_spec=pltpu.PrefetchScalarGridSpec(
            num_scalar_prefetch=0,
            grid=(M // tm,),
            in_specs=[
                pl.BlockSpec((tm, D), lambda i: (i, 0)),
                pl.BlockSpec((1, D), lambda i: (0, 0)),
                pl.BlockSpec((1, D), lambda i: (0, 0)),
            ],
            out_specs=pl.BlockSpec((tm, D), lambda i: (i, 0)),
        ),
        out_shape=jax.ShapeDtypeStruct((M, D), jnp.float32),
        compiler_params=pltpu.CompilerParams(dimension_semantics=("parallel",)),
    )(x2, g, b)
    return out.reshape(shp)


def _ffn_kernel(x_ref, w1_ref, b1_ref, w2_ref, b2_ref, o_ref):
    h = jnp.dot(x_ref[...].astype(jnp.bfloat16), w1_ref[...],
                preferred_element_type=jnp.float32) + b1_ref[...]
    h = jnp.maximum(h, 0.0)  # ReLU, (tm, d_ff) stays in VMEM
    o_ref[...] = jnp.dot(h.astype(jnp.bfloat16), w2_ref[...],
                         preferred_element_type=jnp.float32) + b2_ref[...]


def ffn(x, p):
    shp = x.shape
    D = shp[-1]
    x2 = x.reshape(-1, D)
    M = x2.shape[0]
    d_ff = p["w1"].shape[1]
    tm = _pick_tile(M, 256, 8)
    out = pl.pallas_call(
        _ffn_kernel,
        grid_spec=pltpu.PrefetchScalarGridSpec(
            num_scalar_prefetch=0,
            grid=(M // tm,),
            in_specs=[
                pl.BlockSpec((tm, D), lambda i: (i, 0)),
                pl.BlockSpec((D, d_ff), lambda i: (0, 0)),   # resident weights
                pl.BlockSpec((1, d_ff), lambda i: (0, 0)),
                pl.BlockSpec((d_ff, D), lambda i: (0, 0)),
                pl.BlockSpec((1, D), lambda i: (0, 0)),
            ],
            out_specs=pl.BlockSpec((tm, D), lambda i: (i, 0)),
        ),
        out_shape=jax.ShapeDtypeStruct((M, D), jnp.float32),
        compiler_params=pltpu.CompilerParams(dimension_semantics=("parallel",)),
    )(x2, p["w1"], p["b1"], p["w2"], p["b2"])
    return out.reshape(shp)


def _attention_kernel(q_ref, k_ref, v_ref, m_ref, o_ref, *, scale):
    # One batch per grid step, all heads in one block.
    q = q_ref[0]          # (H, T, dk)
    k = k_ref[0]          # (H, S, dk)
    v = v_ref[0]          # (H, S, dk)
    m = m_ref[0]          # (T, S) float32: 1.0 = masked
    s = jnp.einsum("htd,hsd->hts", q, k,
                   preferred_element_type=jnp.float32) * (1.0 / scale)
    neg = -jnp.finfo(jnp.float32).max
    s = jnp.where(m[None, :, :] > 0.5, neg, s)
    s = s - jnp.max(s, axis=-1, keepdims=True)
    p = jnp.exp(s)
    p = p / jnp.sum(p, axis=-1, keepdims=True)
    o_ref[0] = jnp.einsum("hts,hsd->htd", p, v,
                          preferred_element_type=jnp.float32)


def scaled_dot_product_attention(q, k, v, mask_f, d_k):
    # q: (B, H, T, dk), k/v: (B, H, S, dk), mask_f: (B, T, S) float32
    # TODO(synk): for long sequences switch to flash-style online-softmax KV
    # tiling (grid axis over S with m/l/acc VMEM scratch); full-S blocks are
    # fine at these shapes.
    B, H, T, dk = q.shape
    S = k.shape[2]
    return pl.pallas_call(
        functools.partial(_attention_kernel, scale=math.sqrt(d_k)),
        grid_spec=pltpu.PrefetchScalarGridSpec(
            num_scalar_prefetch=0,
            grid=(B,),
            in_specs=[
                pl.BlockSpec((1, H, T, dk), lambda b: (b, 0, 0, 0)),
                pl.BlockSpec((1, H, S, dk), lambda b: (b, 0, 0, 0)),
                pl.BlockSpec((1, H, S, dk), lambda b: (b, 0, 0, 0)),
                pl.BlockSpec((1, T, S), lambda b: (b, 0, 0)),   # no per-head copy
            ],
            out_specs=pl.BlockSpec((1, H, T, dk), lambda b: (b, 0, 0, 0)),
        ),
        out_shape=jax.ShapeDtypeStruct((B, H, T, dk), jnp.float32),
        compiler_params=pltpu.CompilerParams(dimension_semantics=("parallel",)),
    )(q, k, v, mask_f)


def _proj_logsoftmax_kernel(x_ref, w_ref, b_ref, o_ref, acc_ref):
    # Fused output projection + log-softmax epilogue (logits never hit HBM).
    k = pl.program_id(1)

    @pl.when(k == 0)
    def _():
        acc_ref[...] = jnp.zeros_like(acc_ref)

    acc_ref[...] += jnp.dot(
        x_ref[...].astype(jnp.bfloat16), w_ref[...],
        preferred_element_type=jnp.float32)

    @pl.when(k == pl.num_programs(1) - 1)
    def _():
        logits = acc_ref[...] + b_ref[...]
        m = jnp.max(logits, axis=-1, keepdims=True)
        s = logits - m
        lse = jnp.log(jnp.sum(jnp.exp(s), axis=-1, keepdims=True))
        o_ref[...] = s - lse


def projection_log_softmax(x2d, w, b):
    # x2d: (M, K), w: (K, N) bf16, b: (1, N) -> log_softmax(x @ w + b)
    M, K = x2d.shape
    N = w.shape[1]
    tm = _pick_tile(M, 256, 8)
    tk = _pick_tile(K, 512, 128)
    return pl.pallas_call(
        _proj_logsoftmax_kernel,
        grid_spec=pltpu.PrefetchScalarGridSpec(
            num_scalar_prefetch=0,
            grid=(M // tm, K // tk),
            in_specs=[
                pl.BlockSpec((tm, tk), lambda i, k: (i, k)),
                pl.BlockSpec((tk, N), lambda i, k: (k, 0)),
                pl.BlockSpec((1, N), lambda i, k: (0, 0)),
            ],
            out_specs=pl.BlockSpec((tm, N), lambda i, k: (i, 0)),
            scratch_shapes=[pltpu.VMEM((tm, N), jnp.float32)],
        ),
        out_shape=jax.ShapeDtypeStruct((M, N), jnp.float32),
        compiler_params=pltpu.CompilerParams(
            dimension_semantics=("parallel", "arbitrary")),
    )(x2d, w, b)


# ------------------------------ Model wiring -------------------------------

def multi_head_attention_self(x, mask_f, p, head):
    # x: (B, T, D); fused QKV projection (one (D, 3D) matmul).
    B, T, D = x.shape
    dk = D // head
    qkv = linear(x.reshape(B * T, D), p["wqkv"], p["bqkv"])     # (B*T, 3D)
    qkv = qkv.reshape(B, T, 3, head, dk)
    q = qkv[:, :, 0].transpose(0, 2, 1, 3)                      # (B, H, T, dk)
    k = qkv[:, :, 1].transpose(0, 2, 1, 3)
    v = qkv[:, :, 2].transpose(0, 2, 1, 3)
    ctx = scaled_dot_product_attention(q, k, v, mask_f, dk)     # (B, H, T, dk)
    ctx = ctx.transpose(0, 2, 1, 3).reshape(B * T, D)
    return linear(ctx, p["wo"], p["bo"]).reshape(B, T, D)


def multi_head_attention_cross(x, memory, mask_f, p, head):
    # x: (B, T, D) queries, memory: (B, S, D) keys/values; fused K|V projection.
    B, T, D = x.shape
    S = memory.shape[1]
    dk = D // head
    q = linear(x.reshape(B * T, D), p["wq"], p["bq"])
    q = q.reshape(B, T, head, dk).transpose(0, 2, 1, 3)
    kv = linear(memory.reshape(B * S, D), p["wkv"], p["bkv"])
    kv = kv.reshape(B, S, 2, head, dk)
    k = kv[:, :, 0].transpose(0, 2, 1, 3)
    v = kv[:, :, 1].transpose(0, 2, 1, 3)
    ctx = scaled_dot_product_attention(q, k, v, mask_f, dk)
    ctx = ctx.transpose(0, 2, 1, 3).reshape(B * T, D)
    return linear(ctx, p["wo"], p["bo"]).reshape(B, T, D)


def encoder_layer(x, mask_f, p, head, eps):
    h = layer_norm(x, p["ln1_g"], p["ln1_b"], eps)
    x = multi_head_attention_self(h, mask_f, p["mha"], head) + x
    h = layer_norm(x, p["ln2_g"], p["ln2_b"], eps)
    x = ffn(h, p["ffn"]) + x
    return x


def decoder_layer(tgt, src, mask_src_tgt_f, mask_self_f, p, head, eps):
    h = layer_norm(tgt, p["ln1_g"], p["ln1_b"], eps)
    tgt = multi_head_attention_self(h, mask_self_f, p["self_attn"], head) + tgt
    h = layer_norm(tgt, p["ln2_g"], p["ln2_b"], eps)
    x = multi_head_attention_cross(h, src, mask_src_tgt_f, p["src_tgt_attn"], head) + tgt
    h = layer_norm(x, p["ln3_g"], p["ln3_b"], eps)
    x = ffn(h, p["ffn"]) + x
    return x


def run_encoder(src_ids, mask_f, p, pad_idx, head, eps):
    pad_mask = src_ids == pad_idx
    # TODO(synk): token-embedding gather is left to XLA (jnp.take).
    x = jnp.take(p["tok_emb"], src_ids, axis=0)
    x = x + p["pos_emb"][None, :, :]          # requires S == max_len (as in ref)
    x = layer_norm(x, p["ln_emb_g"], p["ln_emb_b"], eps)
    x = jnp.where(pad_mask[..., None], 0.0, x)
    for lp in p["layers"]:
        x = encoder_layer(x, mask_f, lp, head, eps)
        x = jnp.where(pad_mask[..., None], 0.0, x)
    return layer_norm(x, p["ln_out_g"], p["ln_out_b"], eps)


def run_decoder(tgt_ids, src, mask_src_tgt_f, mask_self_f, p, pad_idx, head, eps):
    pad_mask = tgt_ids == pad_idx
    x = jnp.take(p["tok_emb"], tgt_ids, axis=0)
    x = x + p["pos_emb"][None, :, :]
    x = layer_norm(x, p["ln_emb_g"], p["ln_emb_b"], eps)
    x = jnp.where(pad_mask[..., None], 0.0, x)
    for lp in p["layers"]:
        x = decoder_layer(x, src, mask_src_tgt_f, mask_self_f, lp, head, eps)
        x = jnp.where(pad_mask[..., None], 0.0, x)
    return layer_norm(x, p["ln_out_g"], p["ln_out_b"], eps)


def pad_mask_fn(ids, pad_idx):
    B, S = ids.shape
    m = ids == pad_idx
    return jnp.broadcast_to(m[:, None, :], (B, S, S))


def subsequent_mask_fn(ids):
    B, S = ids.shape
    tri = jnp.tril(jnp.ones((S, S), jnp.float32)) == 0
    return jnp.broadcast_to(tri[None, :, :], (B, S, S))


def transformer_forward(src_ids, tgt_ids, params, pad_idx, head, eps):
    pad_mask_src_f = pad_mask_fn(src_ids, pad_idx).astype(jnp.float32)   # (B,S,S)
    src = run_encoder(src_ids, pad_mask_src_f, params["encoder"], pad_idx, head, eps)
    mask_self_f = jnp.logical_or(
        subsequent_mask_fn(tgt_ids), pad_mask_fn(tgt_ids, pad_idx)
    ).astype(jnp.float32)
    dec = run_decoder(tgt_ids, src, pad_mask_src_f, mask_self_f,
                      params["decoder"], pad_idx, head, eps)
    B, T, D = dec.shape
    out = projection_log_softmax(dec.reshape(B * T, D),
                                 params["w_out"], params["b_out"])
    return out.reshape(B, T, -1)


# ---------------------------- Parameter setup ------------------------------

def init_params(key, *, src_vocab, tgt_vocab, out_size, max_len, d_model, d_ff,
                enc_layers, dec_layers, pad_idx):
    keys = iter(jax.random.split(key, 4096))

    def nrm(shape, scale=0.02):
        return (scale * jax.random.normal(next(keys), shape)).astype(jnp.float32)

    def lin(in_f, out_f):
        # bf16 weights (MXU-friendly, halves weight DMA); f32 bias.
        return nrm((in_f, out_f)).astype(jnp.bfloat16), jnp.zeros((1, out_f), jnp.float32)

    def ln():
        return jnp.ones((1, d_model), jnp.float32), jnp.zeros((1, d_model), jnp.float32)

    def mha_self():
        wq, bq = lin(d_model, d_model)
        wk, bk = lin(d_model, d_model)
        wv, bv = lin(d_model, d_model)
        wo, bo = lin(d_model, d_model)
        return dict(
            wqkv=jnp.concatenate([wq, wk, wv], axis=1),
            bqkv=jnp.concatenate([bq, bk, bv], axis=1),
            wo=wo, bo=bo)

    def mha_cross():
        wq, bq = lin(d_model, d_model)
        wk, bk = lin(d_model, d_model)
        wv, bv = lin(d_model, d_model)
        wo, bo = lin(d_model, d_model)
        return dict(
            wq=wq, bq=bq,
            wkv=jnp.concatenate([wk, wv], axis=1),
            bkv=jnp.concatenate([bk, bv], axis=1),
            wo=wo, bo=bo)

    def ffn_p():
        w1, b1 = lin(d_model, d_ff)
        w2, b2 = lin(d_ff, d_model)
        return dict(w1=w1, b1=b1, w2=w2, b2=b2)

    def enc_layer():
        g1, b1 = ln()
        g2, b2 = ln()
        return dict(ln1_g=g1, ln1_b=b1, mha=mha_self(), ln2_g=g2, ln2_b=b2, ffn=ffn_p())

    def dec_layer():
        g1, b1 = ln()
        g2, b2 = ln()
        g3, b3 = ln()
        return dict(
            ln1_g=g1, ln1_b=b1, self_attn=mha_self(),
            ln2_g=g2, ln2_b=b2, src_tgt_attn=mha_cross(),
            ln3_g=g3, ln3_b=b3, ffn=ffn_p(),
        )

    def stack(vocab, n_layers, layer_fn):
        tok = nrm((vocab, d_model)).at[pad_idx].set(0.0)  # padding_idx row is zero
        pos = nrm((max_len, d_model))
        g_e, b_e = ln()
        g_o, b_o = ln()
        return dict(
            tok_emb=tok, pos_emb=pos,
            ln_emb_g=g_e, ln_emb_b=b_e,
            ln_out_g=g_o, ln_out_b=b_o,
            layers=[layer_fn() for _ in range(n_layers)],
        )

    w_out, b_out = lin(d_model, out_size)
    return dict(
        encoder=stack(src_vocab, enc_layers, enc_layer),
        decoder=stack(tgt_vocab, dec_layers, dec_layer),
        w_out=w_out, b_out=b_out,
    )


# --------------------------------- Main -------------------------------------

if __name__ == "__main__":
    B, S = 2, 8                 # max_len == seq len (required by PositionalEmbeding.expand_as)
    src_vocab, tgt_vocab = 32, 32
    out_size = 16
    d_model, heads, d_ff = 32, 4, 64
    enc_layers = dec_layers = 2
    pad_idx = 0
    layer_norm_eps = 1e-5

    key = jax.random.PRNGKey(0)
    kp, ks, kt = jax.random.split(key, 3)

    params = init_params(
        kp,
        src_vocab=src_vocab, tgt_vocab=tgt_vocab, out_size=out_size,
        max_len=S, d_model=d_model, d_ff=d_ff,
        enc_layers=enc_layers, dec_layers=dec_layers, pad_idx=pad_idx,
    )

    src_ids = jax.random.randint(ks, (B, S), 1, src_vocab, dtype=jnp.int32)
    tgt_ids = jax.random.randint(kt, (B, S), 1, tgt_vocab, dtype=jnp.int32)
    # include some padding tokens to exercise the pad masks
    src_ids = src_ids.at[:, -2:].set(pad_idx)
    tgt_ids = tgt_ids.at[:, -1].set(pad_idx)

    fwd = jax.jit(functools.partial(
        transformer_forward, pad_idx=pad_idx, head=heads, eps=layer_norm_eps))
    out = fwd(src_ids, tgt_ids, params)
    out = jax.block_until_ready(out)

    assert out.shape == (B, S, out_size), out.shape
    assert jnp.all(jnp.isfinite(out))
    print("KERNEL_OK")
</pallas_src>

<mosaic_0001>
module attributes {stable_mosaic.version = 11 : i64} {
  func.func @_layer_norm_kernel(%arg0: i32, %arg1: memref<16x32xf32, #tpu.memory_space<vmem>>, %arg2: memref<1x32xf32, #tpu.memory_space<vmem>>, %arg3: memref<1x32xf32, #tpu.memory_space<vmem>>, %arg4: memref<16x32xf32, #tpu.memory_space<vmem>>) attributes {dimension_semantics = [#tpu.dimension_semantics<parallel>], iteration_bounds = array<i64: 1>, scalar_prefetch = 0 : i64, scratch_operands = 0 : i64, tpu.core_type = #tpu.core_type<tc>, window_params = [{transform_indices = @transform_0, window_bounds = array<i64: 16, 32>}, {pipeline_mode = #tpu.pipeline_mode<synchronous>, transform_indices = @transform_1, window_bounds = array<i64: 1, 32>}, {pipeline_mode = #tpu.pipeline_mode<synchronous>, transform_indices = @transform_2, window_bounds = array<i64: 1, 32>}, {transform_indices = @transform_3, window_bounds = array<i64: 16, 32>}]} {
    %c0 = arith.constant 0 : index
    %c0_0 = arith.constant 0 : index
    %0 = vector.load %arg1[%c0, %c0_0] : memref<16x32xf32, #tpu.memory_space<vmem>>, vector<16x32xf32>
    %cst = arith.constant dense<0.000000e+00> : vector<16xf32>
    %1 = vector.multi_reduction <add>, %0, %cst [1] : vector<16x32xf32> to vector<16xf32>
    %2 = vector.shape_cast %1 : vector<16xf32> to vector<16x1xf32>
    %cst_1 = arith.constant 3.200000e+01 : f32
    %3 = vector.broadcast %cst_1 : f32 to vector<16x1xf32>
    %4 = arith.divf %2, %3 : vector<16x1xf32>
    %5 = vector.broadcast %4 : vector<16x1xf32> to vector<16x32xf32>
    %6 = arith.subf %0, %5 : vector<16x32xf32>
    %7 = arith.mulf %6, %6 : vector<16x32xf32>
    %cst_2 = arith.constant dense<0.000000e+00> : vector<16xf32>
    %8 = vector.multi_reduction <add>, %7, %cst_2 [1] : vector<16x32xf32> to vector<16xf32>
    %9 = vector.shape_cast %8 : vector<16xf32> to vector<16x1xf32>
    %cst_3 = arith.constant 3.200000e+01 : f32
    %10 = vector.broadcast %cst_3 : f32 to vector<16x1xf32>
    %11 = arith.divf %9, %10 : vector<16x1xf32>
    %12 = vector.broadcast %4 : vector<16x1xf32> to vector<16x32xf32>
    %13 = arith.subf %0, %12 : vector<16x32xf32>
    %cst_4 = arith.constant 9.99999974E-6 : f32
    %14 = vector.broadcast %cst_4 : f32 to vector<16x1xf32>
    %15 = arith.addf %11, %14 : vector<16x1xf32>
    %16 = math.rsqrt %15 : vector<16x1xf32>
    %17 = vector.broadcast %16 : vector<16x1xf32> to vector<16x32xf32>
    %18 = arith.mulf %13, %17 : vector<16x32xf32>
    %c0_5 = arith.constant 0 : index
    %c0_6 = arith.constant 0 : index
    %19 = vector.load %arg2[%c0_5, %c0_6] : memref<1x32xf32, #tpu.memory_space<vmem>>, vector<1x32xf32>
    %20 = vector.broadcast %19 : vector<1x32xf32> to vector<16x32xf32>
    %21 = arith.mulf %18, %20 : vector<16x32xf32>
    %c0_7 = arith.constant 0 : index
    %c0_8 = arith.constant 0 : index
    %22 = vector.load %arg3[%c0_7, %c0_8] : memref<1x32xf32, #tpu.memory_space<vmem>>, vector<1x32xf32>
    %23 = vector.broadcast %22 : vector<1x32xf32> to vector<16x32xf32>
    %24 = arith.addf %21, %23 : vector<16x32xf32>
    %c0_9 = arith.constant 0 : index
    %c0_10 = arith.constant 0 : index
    %25 = vector.load %arg4[%c0_9, %c0_10] : memref<16x32xf32, #tpu.memory_space<vmem>>, vector<16x32xf32>
    tpu.vector_store %arg4[%c0_9, %c0_10], %24 {strides = array<i32>} : memref<16x32xf32, #tpu.memory_space<vmem>>, vector<16x32xf32>,
    return
  }
  func.func @transform_0(%arg0: i32) -> (i32, i32) {
    %c0_i32 = arith.constant 0 : i32
    %c0_i32_0 = arith.constant 0 : i32
    return %arg0, %c0_i32 : i32, i32
  }
  func.func @transform_1(%arg0: i32) -> (i32, i32) {
    %c0_i32 = arith.constant 0 : i32
    %c0_i32_0 = arith.constant 0 : i32
    %c0_i32_1 = arith.constant 0 : i32
    return %c0_i32, %c0_i32_0 : i32, i32
  }
  func.func @transform_2(%arg0: i32) -> (i32, i32) {
    %c0_i32 = arith.constant 0 : i32
    %c0_i32_0 = arith.constant 0 : i32
    %c0_i32_1 = arith.constant 0 : i32
    return %c0_i32, %c0_i32_0 : i32, i32
  }
  func.func @transform_3(%arg0: i32) -> (i32, i32) {
    %c0_i32 = arith.constant 0 : i32
    %c0_i32_0 = arith.constant 0 : i32
    return %arg0, %c0_i32 : i32, i32
  }
}

module attributes {stable_mosaic.version = 11 : i64} {
  func.func @_linear_kernel(%arg0: i32, %arg1: i32, %arg2: i32, %arg3: memref<16x32xf32, #tpu.memory_space<vmem>>, %arg4: memref<32x96xbf16, #tpu.memory_space<vmem>>, %arg5: memref<1x96xf32, #tpu.memory_space<vmem>>, %arg6: memref<16x96xf32, #tpu.memory_space<vmem>>, %arg7: memref<16x96xf32, #tpu.memory_space<vmem>>) attributes {dimension_semantics = [#tpu.dimension_semantics<parallel>, #tpu.dimension_semantics<parallel>, #tpu.dimension_semantics<arbitrary>], iteration_bounds = array<i64: 1, 1, 1>, scalar_prefetch = 0 : i64, scratch_operands = 1 : i64, tpu.core_type = #tpu.core_type<tc>, window_params = [{transform_indices = @transform_0, window_bounds = array<i64: 16, 32>}, {transform_indices = @transform_1, window_bounds = array<i64: 32, 96>}, {transform_indices = @transform_2, window_bounds = array<i64: 1, 96>}, {transform_indices = @transform_3, window_bounds = array<i64: 16, 96>}]} {
    %c0_i32 = arith.constant 0 : i32
    %0 = arith.cmpi eq, %arg2, %c0_i32 : i32
    %1 = arith.extui %0 : i1 to i32
    %c0_i32_0 = arith.constant 0 : i32
    %2 = arith.cmpi ne, %1, %c0_i32_0 : i32
    scf.if %2 {
      %cst_10 = arith.constant 0.000000e+00 : f32
      %13 = vector.broadcast %cst_10 : f32 to vector<16x96xf32>
      %c0_11 = arith.constant 0 : index
      %c0_12 = arith.constant 0 : index
      %14 = vector.load %arg7[%c0_11, %c0_12] : memref<16x96xf32, #tpu.memory_space<vmem>>, vector<16x96xf32>
      tpu.vector_store %arg7[%c0_11, %c0_12], %13 {strides = array<i32>} : memref<16x96xf32, #tpu.memory_space<vmem>>, vector<16x96xf32>,
    } else {
    }
    %c0 = arith.constant 0 : index
    %c0_1 = arith.constant 0 : index
    %3 = vector.load %arg7[%c0, %c0_1] : memref<16x96xf32, #tpu.memory_space<vmem>>, vector<16x96xf32>
    %c0_2 = arith.constant 0 : index
    %c0_3 = arith.constant 0 : index
    %4 = vector.load %arg3[%c0_2, %c0_3] : memref<16x32xf32, #tpu.memory_space<vmem>>, vector<16x32xf32>
    %5 = arith.truncf %4 : vector<16x32xf32> to vector<16x32xbf16>
    %c0_4 = arith.constant 0 : index
    %c0_5 = arith.constant 0 : index
    %6 = vector.load %arg4[%c0_4, %c0_5] : memref<32x96xbf16, #tpu.memory_space<vmem>>, vector<32x96xbf16>
    %cst = arith.constant dense<0.000000e+00> : vector<16x96xf32>
    %7 = tpu.matmul %5, %6, %cst {dimension_numbers = #tpu.dot_dimension_numbers<[1], [0], [0], [1], [0, 0, 1, 1], [], []>} : vector<16x32xbf16>, vector<32x96xbf16>, vector<16x96xf32> -> vector<16x96xf32>
    %8 = arith.addf %3, %7 : vector<16x96xf32>
    %c0_6 = arith.constant 0 : index
    %c0_7 = arith.constant 0 : index
    %9 = vector.load %arg7[%c0_6, %c0_7] : memref<16x96xf32, #tpu.memory_space<vmem>>, vector<16x96xf32>
    tpu.vector_store %arg7[%c0_6, %c0_7], %8 {strides = array<i32>} : memref<16x96xf32, #tpu.memory_space<vmem>>, vector<16x96xf32>,
    %c0_i32_8 = arith.constant 0 : i32
    %10 = arith.cmpi eq, %arg2, %c0_i32_8 : i32
    %11 = arith.extui %10 : i1 to i32
    %c0_i32_9 = arith.constant 0 : i32
    %12 = arith.cmpi ne, %11, %c0_i32_9 : i32
    scf.if %12 {
      %c0_10 = arith.constant 0 : index
      %c0_11 = arith.constant 0 : index
      %13 = vector.load %arg7[%c0_10, %c0_11] : memref<16x96xf32, #tpu.memory_space<vmem>>, vector<16x96xf32>
      %c0_12 = arith.constant 0 : index
      %c0_13 = arith.constant 0 : index
      %14 = vector.load %arg5[%c0_12, %c0_13] : memref<1x96xf32, #tpu.memory_space<vmem>>, vector<1x96xf32>
      %15 = vector.broadcast %14 : vector<1x96xf32> to vector<16x96xf32>
      %16 = arith.addf %13, %15 : vector<16x96xf32>
      %c0_14 = arith.constant 0 : index
      %c0_15 = arith.constant 0 : index
      %17 = vector.load %arg6[%c0_14, %c0_15] : memref<16x96xf32, #tpu.memory_space<vmem>>, vector<16x96xf32>
      tpu.vector_store %arg6[%c0_14, %c0_15], %16 {strides = array<i32>} : memref<16x96xf32, #tpu.memory_space<vmem>>, vector<16x96xf32>,
    } else {
    }
    return
  }
  func.func @transform_0(%arg0: i32, %arg1: i32, %arg2: i32) -> (i32, i32) {
    %c0_i32 = arith.constant 0 : i32
    return %arg0, %arg2 : i32, i32
  }
  func.func @transform_1(%arg0: i32, %arg1: i32, %arg2: i32) -> (i32, i32) {
    %c0_i32 = arith.constant 0 : i32
    return %arg2, %arg1 : i32, i32
  }
  func.func @transform_2(%arg0: i32, %arg1: i32, %arg2: i32) -> (i32, i32) {
    %c0_i32 = arith.constant 0 : i32
    %c0_i32_0 = arith.constant 0 : i32
    return %c0_i32, %arg1 : i32, i32
  }
  func.func @transform_3(%arg0: i32, %arg1: i32, %arg2: i32) -> (i32, i32) {
    %c0_i32 = arith.constant 0 : i32
    return %arg0, %arg1 : i32, i32
  }
}

module attributes {stable_mosaic.version = 11 : i64} {
  func.func @_attention_kernel(%arg0: i32, %arg1: memref<1x4x8x8xf32, #tpu.memory_space<vmem>>, %arg2: memref<1x4x8x8xf32, #tpu.memory_space<vmem>>, %arg3: memref<1x4x8x8xf32, #tpu.memory_space<vmem>>, %arg4: memref<1x8x8xf32, #tpu.memory_space<vmem>>, %arg5: memref<1x4x8x8xf32, #tpu.memory_space<vmem>>) attributes {dimension_semantics = [#tpu.dimension_semantics<parallel>], iteration_bounds = array<i64: 2>, scalar_prefetch = 0 : i64, scratch_operands = 0 : i64, tpu.core_type = #tpu.core_type<tc>, window_params = [{transform_indices = @transform_0, window_bounds = array<i64: 1, 4, 8, 8>}, {transform_indices = @transform_1, window_bounds = array<i64: 1, 4, 8, 8>}, {transform_indices = @transform_2, window_bounds = array<i64: 1, 4, 8, 8>}, {transform_indices = @transform_3, window_bounds = array<i64: 1, 8, 8>}, {transform_indices = @transform_4, window_bounds = array<i64: 1, 4, 8, 8>}]} {
    %c0 = arith.constant 0 : index
    %c0_0 = arith.constant 0 : index
    %c0_1 = arith.constant 0 : index
    %c0_2 = arith.constant 0 : index
    %0 = vector.load %arg1[%c0, %c0_0, %c0_1, %c0_2] : memref<1x4x8x8xf32, #tpu.memory_space<vmem>>, vector<1x4x8x8xf32>
    %1 = vector.shape_cast %0 : vector<1x4x8x8xf32> to vector<4x8x8xf32>
    %c0_3 = arith.constant 0 : index
    %c0_4 = arith.constant 0 : index
    %c0_5 = arith.constant 0 : index
    %c0_6 = arith.constant 0 : index
    %2 = vector.load %arg2[%c0_3, %c0_4, %c0_5, %c0_6] : memref<1x4x8x8xf32, #tpu.memory_space<vmem>>, vector<1x4x8x8xf32>
    %3 = vector.shape_cast %2 : vector<1x4x8x8xf32> to vector<4x8x8xf32>
    %c0_7 = arith.constant 0 : index
    %c0_8 = arith.constant 0 : index
    %c0_9 = arith.constant 0 : index
    %c0_10 = arith.constant 0 : index
    %4 = vector.load %arg3[%c0_7, %c0_8, %c0_9, %c0_10] : memref<1x4x8x8xf32, #tpu.memory_space<vmem>>, vector<1x4x8x8xf32>
    %5 = vector.shape_cast %4 : vector<1x4x8x8xf32> to vector<4x8x8xf32>
    %c0_11 = arith.constant 0 : index
    %c0_12 = arith.constant 0 : index
    %c0_13 = arith.constant 0 : index
    %6 = vector.load %arg4[%c0_11, %c0_12, %c0_13] : memref<1x8x8xf32, #tpu.memory_space<vmem>>, vector<1x8x8xf32>
    %7 = vector.shape_cast %6 : vector<1x8x8xf32> to vector<8x8xf32>
    "tpu.trace_start"() <{level = 10 : i32, message = "htd,hsd->hts"}> : () -> ()
    %cst = arith.constant dense<0.000000e+00> : vector<4x8x8xf32>
    %8 = tpu.matmul %1, %3, %cst {dimension_numbers = #tpu.dot_dimension_numbers<[2], [2], [1], [1], [0, 0, 0, 1, 1, 1], [0], [0]>} : vector<4x8x8xf32>, vector<4x8x8xf32>, vector<4x8x8xf32> -> vector<4x8x8xf32>
    "tpu.trace_stop"() : () -> ()
    %cst_14 = arith.constant 0.353553385 : f32
    %9 = vector.broadcast %cst_14 : f32 to vector<4x8x8xf32>
    %10 = arith.mulf %8, %9 : vector<4x8x8xf32>
    %11 = vector.shape_cast %7 : vector<8x8xf32> to vector<1x8x8xf32>
    %cst_15 = arith.constant 5.000000e-01 : f32
    %12 = vector.broadcast %cst_15 : f32 to vector<1x8x8xf32>
    %13 = arith.cmpf ogt, %11, %12 : vector<1x8x8xf32>
    %cst_16 = arith.constant -3.40282347E+38 : f32
    %14 = vector.shape_cast %13 : vector<1x8x8xi1> to vector<1x8x8xi1>
    %15 = vector.broadcast %14 : vector<1x8x8xi1> to vector<4x8x8xi1>
    %16 = vector.broadcast %cst_16 : f32 to vector<4x8x8xf32>
    %17 = arith.select %15, %16, %10 : vector<4x8x8xi1>, vector<4x8x8xf32>
    %cst_17 = arith.constant dense<0xFF800000> : vector<4x8xf32>
    %18 = vector.multi_reduction <maximumf>, %17, %cst_17 [2] : vector<4x8x8xf32> to vector<4x8xf32>
    %19 = vector.shape_cast %18 : vector<4x8xf32> to vector<4x8x1xf32>
    %20 = vector.broadcast %19 : vector<4x8x1xf32> to vector<4x8x8xf32>
    %21 = arith.subf %17, %20 : vector<4x8x8xf32>
    %22 = math.exp %21 : vector<4x8x8xf32>
    %cst_18 = arith.constant dense<0.000000e+00> : vector<4x8xf32>
    %23 = vector.multi_reduction <add>, %22, %cst_18 [2] : vector<4x8x8xf32> to vector<4x8xf32>
    %24 = vector.shape_cast %23 : vector<4x8xf32> to vector<4x8x1xf32>
    %25 = vector.broadcast %24 : vector<4x8x1xf32> to vector<4x8x8xf32>
    %26 = arith.divf %22, %25 : vector<4x8x8xf32>
    "tpu.trace_start"() <{level = 10 : i32, message = "hts,hsd->htd"}> : () -> ()
    %cst_19 = arith.constant dense<0.000000e+00> : vector<4x8x8xf32>
    %27 = tpu.matmul %26, %5, %cst_19 {dimension_numbers = #tpu.dot_dimension_numbers<[2], [1], [1], [2], [0, 0, 0, 1, 1, 2], [0], [0]>} : vector<4x8x8xf32>, vector<4x8x8xf32>, vector<4x8x8xf32> -> vector<4x8x8xf32>
    "tpu.trace_stop"() : () -> ()
    %c0_20 = arith.constant 0 : index
    %c0_21 = arith.constant 0 : index
    %c0_22 = arith.constant 0 : index
    %c0_23 = arith.constant 0 : index
    %28 = vector.load %arg5[%c0_20, %c0_21, %c0_22, %c0_23] : memref<1x4x8x8xf32, #tpu.memory_space<vmem>>, vector<1x4x8x8xf32>
    %29 = vector.shape_cast %28 : vector<1x4x8x8xf32> to vector<4x8x8xf32>
    %30 = vector.shape_cast %27 : vector<4x8x8xf32> to vector<1x4x8x8xf32>
    tpu.vector_store %arg5[%c0_20, %c0_21, %c0_22, %c0_23], %30 {strides = array<i32>} : memref<1x4x8x8xf32, #tpu.memory_space<vmem>>, vector<1x4x8x8xf32>,
    return
  }
  func.func @transform_0(%arg0: i32) -> (i32, i32, i32, i32) {
    %c0_i32 = arith.constant 0 : i32
    %c0_i32_0 = arith.constant 0 : i32
    %c0_i32_1 = arith.constant 0 : i32
    %c0_i32_2 = arith.constant 0 : i32
    return %arg0, %c0_i32, %c0_i32_0, %c0_i32_1 : i32, i32, i32, i32
  }
  func.func @transform_1(%arg0: i32) -> (i32, i32, i32, i32) {
    %c0_i32 = arith.constant 0 : i32
    %c0_i32_0 = arith.constant 0 : i32
    %c0_i32_1 = arith.constant 0 : i32
    %c0_i32_2 = arith.constant 0 : i32
    return %arg0, %c0_i32, %c0_i32_0, %c0_i32_1 : i32, i32, i32, i32
  }
  func.func @transform_2(%arg0: i32) -> (i32, i32, i32, i32) {
    %c0_i32 = arith.constant 0 : i32
    %c0_i32_0 = arith.constant 0 : i32
    %c0_i32_1 = arith.constant 0 : i32
    %c0_i32_2 = arith.constant 0 : i32
    return %arg0, %c0_i32, %c0_i32_0, %c0_i32_1 : i32, i32, i32, i32
  }
  func.func @transform_3(%arg0: i32) -> (i32, i32, i32) {
    %c0_i32 = arith.constant 0 : i32
    %c0_i32_0 = arith.constant 0 : i32
    %c0_i32_1 = arith.constant 0 : i32
    return %arg0, %c0_i32, %c0_i32_0 : i32, i32, i32
  }
  func.func @transform_4(%arg0: i32) -> (i32, i32, i32, i32) {
    %c0_i32 = arith.constant 0 : i32
    %c0_i32_0 = arith.constant 0 : i32
    %c0_i32_1 = arith.constant 0 : i32
    %c0_i32_2 = arith.constant 0 : i32
    return %arg0, %c0_i32, %c0_i32_0, %c0_i32_1 : i32, i32, i32, i32
  }
}

module attributes {stable_mosaic.version = 11 : i64} {
  func.func @_linear_kernel(%arg0: i32, %arg1: i32, %arg2: i32, %arg3: memref<16x32xf32, #tpu.memory_space<vmem>>, %arg4: memref<32x32xbf16, #tpu.memory_space<vmem>>, %arg5: memref<1x32xf32, #tpu.memory_space<vmem>>, %arg6: memref<16x32xf32, #tpu.memory_space<vmem>>, %arg7: memref<16x32xf32, #tpu.memory_space<vmem>>) attributes {dimension_semantics = [#tpu.dimension_semantics<parallel>, #tpu.dimension_semantics<parallel>, #tpu.dimension_semantics<arbitrary>], iteration_bounds = array<i64: 1, 1, 1>, scalar_prefetch = 0 : i64, scratch_operands = 1 : i64, tpu.core_type = #tpu.core_type<tc>, window_params = [{transform_indices = @transform_0, window_bounds = array<i64: 16, 32>}, {transform_indices = @transform_1, window_bounds = array<i64: 32, 32>}, {transform_indices = @transform_2, window_bounds = array<i64: 1, 32>}, {transform_indices = @transform_3, window_bounds = array<i64: 16, 32>}]} {
    %c0_i32 = arith.constant 0 : i32
    %0 = arith.cmpi eq, %arg2, %c0_i32 : i32
    %1 = arith.extui %0 : i1 to i32
    %c0_i32_0 = arith.constant 0 : i32
    %2 = arith.cmpi ne, %1, %c0_i32_0 : i32
    scf.if %2 {
      %cst_10 = arith.constant 0.000000e+00 : f32
      %13 = vector.broadcast %cst_10 : f32 to vector<16x32xf32>
      %c0_11 = arith.constant 0 : index
      %c0_12 = arith.constant 0 : index
      %14 = vector.load %arg7[%c0_11, %c0_12] : memref<16x32xf32, #tpu.memory_space<vmem>>, vector<16x32xf32>
      tpu.vector_store %arg7[%c0_11, %c0_12], %13 {strides = array<i32>} : memref<16x32xf32, #tpu.memory_space<vmem>>, vector<16x32xf32>,
    } else {
    }
    %c0 = arith.constant 0 : index
    %c0_1 = arith.constant 0 : index
    %3 = vector.load %arg7[%c0, %c0_1] : memref<16x32xf32, #tpu.memory_space<vmem>>, vector<16x32xf32>
    %c0_2 = arith.constant 0 : index
    %c0_3 = arith.constant 0 : index
    %4 = vector.load %arg3[%c0_2, %c0_3] : memref<16x32xf32, #tpu.memory_space<vmem>>, vector<16x32xf32>
    %5 = arith.truncf %4 : vector<16x32xf32> to vector<16x32xbf16>
    %c0_4 = arith.constant 0 : index
    %c0_5 = arith.constant 0 : index
    %6 = vector.load %arg4[%c0_4, %c0_5] : memref<32x32xbf16, #tpu.memory_space<vmem>>, vector<32x32xbf16>
    %cst = arith.constant dense<0.000000e+00> : vector<16x32xf32>
    %7 = tpu.matmul %5, %6, %cst {dimension_numbers = #tpu.dot_dimension_numbers<[1], [0], [0], [1], [0, 0, 1, 1], [], []>} : vector<16x32xbf16>, vector<32x32xbf16>, vector<16x32xf32> -> vector<16x32xf32>
    %8 = arith.addf %3, %7 : vector<16x32xf32>
    %c0_6 = arith.constant 0 : index
    %c0_7 = arith.constant 0 : index
    %9 = vector.load %arg7[%c0_6, %c0_7] : memref<16x32xf32, #tpu.memory_space<vmem>>, vector<16x32xf32>
    tpu.vector_store %arg7[%c0_6, %c0_7], %8 {strides = array<i32>} : memref<16x32xf32, #tpu.memory_space<vmem>>, vector<16x32xf32>,
    %c0_i32_8 = arith.constant 0 : i32
    %10 = arith.cmpi eq, %arg2, %c0_i32_8 : i32
    %11 = arith.extui %10 : i1 to i32
    %c0_i32_9 = arith.constant 0 : i32
    %12 = arith.cmpi ne, %11, %c0_i32_9 : i32
    scf.if %12 {
      %c0_10 = arith.constant 0 : index
      %c0_11 = arith.constant 0 : index
      %13 = vector.load %arg7[%c0_10, %c0_11] : memref<16x32xf32, #tpu.memory_space<vmem>>, vector<16x32xf32>
      %c0_12 = arith.constant 0 : index
      %c0_13 = arith.constant 0 : index
      %14 = vector.load %arg5[%c0_12, %c0_13] : memref<1x32xf32, #tpu.memory_space<vmem>>, vector<1x32xf32>
      %15 = vector.broadcast %14 : vector<1x32xf32> to vector<16x32xf32>
      %16 = arith.addf %13, %15 : vector<16x32xf32>
      %c0_14 = arith.constant 0 : index
      %c0_15 = arith.constant 0 : index
      %17 = vector.load %arg6[%c0_14, %c0_15] : memref<16x32xf32, #tpu.memory_space<vmem>>, vector<16x32xf32>
      tpu.vector_store %arg6[%c0_14, %c0_15], %16 {strides = array<i32>} : memref<16x32xf32, #tpu.memory_space<vmem>>, vector<16x32xf32>,
    } else {
    }
    return
  }
  func.func @transform_0(%arg0: i32, %arg1: i32, %arg2: i32) -> (i32, i32) {
    %c0_i32 = arith.constant 0 : i32
    return %arg0, %arg2 : i32, i32
  }
  func.func @transform_1(%arg0: i32, %arg1: i32, %arg2: i32) -> (i32, i32) {
    %c0_i32 = arith.constant 0 : i32
    return %arg2, %arg1 : i32, i32
  }
  func.func @transform_2(%arg0: i32, %arg1: i32, %arg2: i32) -> (i32, i32) {
    %c0_i32 = arith.constant 0 : i32
    %c0_i32_0 = arith.constant 0 : i32
    return %c0_i32, %arg1 : i32, i32
  }
  func.func @transform_3(%arg0: i32, %arg1: i32, %arg2: i32) -> (i32, i32) {
    %c0_i32 = arith.constant 0 : i32
    return %arg0, %arg1 : i32, i32
  }
}

module attributes {stable_mosaic.version = 11 : i64} {
  func.func @_ffn_kernel(%arg0: i32, %arg1: memref<16x32xf32, #tpu.memory_space<vmem>>, %arg2: memref<32x64xbf16, #tpu.memory_space<vmem>>, %arg3: memref<1x64xf32, #tpu.memory_space<vmem>>, %arg4: memref<64x32xbf16, #tpu.memory_space<vmem>>, %arg5: memref<1x32xf32, #tpu.memory_space<vmem>>, %arg6: memref<16x32xf32, #tpu.memory_space<vmem>>) attributes {dimension_semantics = [#tpu.dimension_semantics<parallel>], iteration_bounds = array<i64: 1>, scalar_prefetch = 0 : i64, scratch_operands = 0 : i64, tpu.core_type = #tpu.core_type<tc>, window_params = [{transform_indices = @transform_0, window_bounds = array<i64: 16, 32>}, {pipeline_mode = #tpu.pipeline_mode<synchronous>, transform_indices = @transform_1, window_bounds = array<i64: 32, 64>}, {pipeline_mode = #tpu.pipeline_mode<synchronous>, transform_indices = @transform_2, window_bounds = array<i64: 1, 64>}, {pipeline_mode = #tpu.pipeline_mode<synchronous>, transform_indices = @transform_3, window_bounds = array<i64: 64, 32>}, {pipeline_mode = #tpu.pipeline_mode<synchronous>, transform_indices = @transform_4, window_bounds = array<i64: 1, 32>}, {transform_indices = @transform_5, window_bounds = array<i64: 16, 32>}]} {
    %c0 = arith.constant 0 : index
    %c0_0 = arith.constant 0 : index
    %0 = vector.load %arg1[%c0, %c0_0] : memref<16x32xf32, #tpu.memory_space<vmem>>, vector<16x32xf32>
    %1 = arith.truncf %0 : vector<16x32xf32> to vector<16x32xbf16>
    %c0_1 = arith.constant 0 : index
    %c0_2 = arith.constant 0 : index
    %2 = vector.load %arg2[%c0_1, %c0_2] : memref<32x64xbf16, #tpu.memory_space<vmem>>, vector<32x64xbf16>
    %cst = arith.constant dense<0.000000e+00> : vector<16x64xf32>
    %3 = tpu.matmul %1, %2, %cst {dimension_numbers = #tpu.dot_dimension_numbers<[1], [0], [0], [1], [0, 0, 1, 1], [], []>} : vector<16x32xbf16>, vector<32x64xbf16>, vector<16x64xf32> -> vector<16x64xf32>
    %c0_3 = arith.constant 0 : index
    %c0_4 = arith.constant 0 : index
    %4 = vector.load %arg3[%c0_3, %c0_4] : memref<1x64xf32, #tpu.memory_space<vmem>>, vector<1x64xf32>
    %5 = vector.broadcast %4 : vector<1x64xf32> to vector<16x64xf32>
    %6 = arith.addf %3, %5 : vector<16x64xf32>
    %cst_5 = arith.constant 0.000000e+00 : f32
    %7 = vector.broadcast %cst_5 : f32 to vector<16x64xf32>
    %8 = arith.maximumf %6, %7 : vector<16x64xf32>
    %9 = arith.truncf %8 : vector<16x64xf32> to vector<16x64xbf16>
    %c0_6 = arith.constant 0 : index
    %c0_7 = arith.constant 0 : index
    %10 = vector.load %arg4[%c0_6, %c0_7] : memref<64x32xbf16, #tpu.memory_space<vmem>>, vector<64x32xbf16>
    %cst_8 = arith.constant dense<0.000000e+00> : vector<16x32xf32>
    %11 = tpu.matmul %9, %10, %cst_8 {dimension_numbers = #tpu.dot_dimension_numbers<[1], [0], [0], [1], [0, 0, 1, 1], [], []>} : vector<16x64xbf16>, vector<64x32xbf16>, vector<16x32xf32> -> vector<16x32xf32>
    %c0_9 = arith.constant 0 : index
    %c0_10 = arith.constant 0 : index
    %12 = vector.load %arg5[%c0_9, %c0_10] : memref<1x32xf32, #tpu.memory_space<vmem>>, vector<1x32xf32>
    %13 = vector.broadcast %12 : vector<1x32xf32> to vector<16x32xf32>
    %14 = arith.addf %11, %13 : vector<16x32xf32>
    %c0_11 = arith.constant 0 : index
    %c0_12 = arith.constant 0 : index
    %15 = vector.load %arg6[%c0_11, %c0_12] : memref<16x32xf32, #tpu.memory_space<vmem>>, vector<16x32xf32>
    tpu.vector_store %arg6[%c0_11, %c0_12], %14 {strides = array<i32>} : memref<16x32xf32, #tpu.memory_space<vmem>>, vector<16x32xf32>,
    return
  }
  func.func @transform_0(%arg0: i32) -> (i32, i32) {
    %c0_i32 = arith.constant 0 : i32
    %c0_i32_0 = arith.constant 0 : i32
    return %arg0, %c0_i32 : i32, i32
  }
  func.func @transform_1(%arg0: i32) -> (i32, i32) {
    %c0_i32 = arith.constant 0 : i32
    %c0_i32_0 = arith.constant 0 : i32
    %c0_i32_1 = arith.constant 0 : i32
    return %c0_i32, %c0_i32_0 : i32, i32
  }
  func.func @transform_2(%arg0: i32) -> (i32, i32) {
    %c0_i32 = arith.constant 0 : i32
    %c0_i32_0 = arith.constant 0 : i32
    %c0_i32_1 = arith.constant 0 : i32
    return %c0_i32, %c0_i32_0 : i32, i32
  }
  func.func @transform_3(%arg0: i32) -> (i32, i32) {
    %c0_i32 = arith.constant 0 : i32
    %c0_i32_0 = arith.constant 0 : i32
    %c0_i32_1 = arith.constant 0 : i32
    return %c0_i32, %c0_i32_0 : i32, i32
  }
  func.func @transform_4(%arg0: i32) -> (i32, i32) {
    %c0_i32 = arith.constant 0 : i32
    %c0_i32_0 = arith.constant 0 : i32
    %c0_i32_1 = arith.constant 0 : i32
    return %c0_i32, %c0_i32_0 : i32, i32
  }
  func.func @transform_5(%arg0: i32) -> (i32, i32) {
    %c0_i32 = arith.constant 0 : i32
    %c0_i32_0 = arith.constant 0 : i32
    return %arg0, %c0_i32 : i32, i32
  }
}

module attributes {stable_mosaic.version = 11 : i64} {
  func.func @_linear_kernel(%arg0: i32, %arg1: i32, %arg2: i32, %arg3: memref<16x32xf32, #tpu.memory_space<vmem>>, %arg4: memref<32x64xbf16, #tpu.memory_space<vmem>>, %arg5: memref<1x64xf32, #tpu.memory_space<vmem>>, %arg6: memref<16x64xf32, #tpu.memory_space<vmem>>, %arg7: memref<16x64xf32, #tpu.memory_space<vmem>>) attributes {dimension_semantics = [#tpu.dimension_semantics<parallel>, #tpu.dimension_semantics<parallel>, #tpu.dimension_semantics<arbitrary>], iteration_bounds = array<i64: 1, 1, 1>, scalar_prefetch = 0 : i64, scratch_operands = 1 : i64, tpu.core_type = #tpu.core_type<tc>, window_params = [{transform_indices = @transform_0, window_bounds = array<i64: 16, 32>}, {transform_indices = @transform_1, window_bounds = array<i64: 32, 64>}, {transform_indices = @transform_2, window_bounds = array<i64: 1, 64>}, {transform_indices = @transform_3, window_bounds = array<i64: 16, 64>}]} {
    %c0_i32 = arith.constant 0 : i32
    %0 = arith.cmpi eq, %arg2, %c0_i32 : i32
    %1 = arith.extui %0 : i1 to i32
    %c0_i32_0 = arith.constant 0 : i32
    %2 = arith.cmpi ne, %1, %c0_i32_0 : i32
    scf.if %2 {
      %cst_10 = arith.constant 0.000000e+00 : f32
      %13 = vector.broadcast %cst_10 : f32 to vector<16x64xf32>
      %c0_11 = arith.constant 0 : index
      %c0_12 = arith.constant 0 : index
      %14 = vector.load %arg7[%c0_11, %c0_12] : memref<16x64xf32, #tpu.memory_space<vmem>>, vector<16x64xf32>
      tpu.vector_store %arg7[%c0_11, %c0_12], %13 {strides = array<i32>} : memref<16x64xf32, #tpu.memory_space<vmem>>, vector<16x64xf32>,
    } else {
    }
    %c0 = arith.constant 0 : index
    %c0_1 = arith.constant 0 : index
    %3 = vector.load %arg7[%c0, %c0_1] : memref<16x64xf32, #tpu.memory_space<vmem>>, vector<16x64xf32>
    %c0_2 = arith.constant 0 : index
    %c0_3 = arith.constant 0 : index
    %4 = vector.load %arg3[%c0_2, %c0_3] : memref<16x32xf32, #tpu.memory_space<vmem>>, vector<16x32xf32>
    %5 = arith.truncf %4 : vector<16x32xf32> to vector<16x32xbf16>
    %c0_4 = arith.constant 0 : index
    %c0_5 = arith.constant 0 : index
    %6 = vector.load %arg4[%c0_4, %c0_5] : memref<32x64xbf16, #tpu.memory_space<vmem>>, vector<32x64xbf16>
    %cst = arith.constant dense<0.000000e+00> : vector<16x64xf32>
    %7 = tpu.matmul %5, %6, %cst {dimension_numbers = #tpu.dot_dimension_numbers<[1], [0], [0], [1], [0, 0, 1, 1], [], []>} : vector<16x32xbf16>, vector<32x64xbf16>, vector<16x64xf32> -> vector<16x64xf32>
    %8 = arith.addf %3, %7 : vector<16x64xf32>
    %c0_6 = arith.constant 0 : index
    %c0_7 = arith.constant 0 : index
    %9 = vector.load %arg7[%c0_6, %c0_7] : memref<16x64xf32, #tpu.memory_space<vmem>>, vector<16x64xf32>
    tpu.vector_store %arg7[%c0_6, %c0_7], %8 {strides = array<i32>} : memref<16x64xf32, #tpu.memory_space<vmem>>, vector<16x64xf32>,
    %c0_i32_8 = arith.constant 0 : i32
    %10 = arith.cmpi eq, %arg2, %c0_i32_8 : i32
    %11 = arith.extui %10 : i1 to i32
    %c0_i32_9 = arith.constant 0 : i32
    %12 = arith.cmpi ne, %11, %c0_i32_9 : i32
    scf.if %12 {
      %c0_10 = arith.constant 0 : index
      %c0_11 = arith.constant 0 : index
      %13 = vector.load %arg7[%c0_10, %c0_11] : memref<16x64xf32, #tpu.memory_space<vmem>>, vector<16x64xf32>
      %c0_12 = arith.constant 0 : index
      %c0_13 = arith.constant 0 : index
      %14 = vector.load %arg5[%c0_12, %c0_13] : memref<1x64xf32, #tpu.memory_space<vmem>>, vector<1x64xf32>
      %15 = vector.broadcast %14 : vector<1x64xf32> to vector<16x64xf32>
      %16 = arith.addf %13, %15 : vector<16x64xf32>
      %c0_14 = arith.constant 0 : index
      %c0_15 = arith.constant 0 : index
      %17 = vector.load %arg6[%c0_14, %c0_15] : memref<16x64xf32, #tpu.memory_space<vmem>>, vector<16x64xf32>
      tpu.vector_store %arg6[%c0_14, %c0_15], %16 {strides = array<i32>} : memref<16x64xf32, #tpu.memory_space<vmem>>, vector<16x64xf32>,
    } else {
    }
    return
  }
  func.func @transform_0(%arg0: i32, %arg1: i32, %arg2: i32) -> (i32, i32) {
    %c0_i32 = arith.constant 0 : i32
    return %arg0, %arg2 : i32, i32
  }
  func.func @transform_1(%arg0: i32, %arg1: i32, %arg2: i32) -> (i32, i32) {
    %c0_i32 = arith.constant 0 : i32
    return %arg2, %arg1 : i32, i32
  }
  func.func @transform_2(%arg0: i32, %arg1: i32, %arg2: i32) -> (i32, i32) {
    %c0_i32 = arith.constant 0 : i32
    %c0_i32_0 = arith.constant 0 : i32
    return %c0_i32, %arg1 : i32, i32
  }
  func.func @transform_3(%arg0: i32, %arg1: i32, %arg2: i32) -> (i32, i32) {
    %c0_i32 = arith.constant 0 : i32
    return %arg0, %arg1 : i32, i32
  }
}

module attributes {stable_mosaic.version = 11 : i64} {
  func.func @_proj_logsoftmax_kernel(%arg0: i32, %arg1: i32, %arg2: memref<16x32xf32, #tpu.memory_space<vmem>>, %arg3: memref<32x16xbf16, #tpu.memory_space<vmem>>, %arg4: memref<1x16xf32, #tpu.memory_space<vmem>>, %arg5: memref<16x16xf32, #tpu.memory_space<vmem>>, %arg6: memref<16x16xf32, #tpu.memory_space<vmem>>) attributes {dimension_semantics = [#tpu.dimension_semantics<parallel>, #tpu.dimension_semantics<arbitrary>], iteration_bounds = array<i64: 1, 1>, scalar_prefetch = 0 : i64, scratch_operands = 1 : i64, tpu.core_type = #tpu.core_type<tc>, window_params = [{transform_indices = @transform_0, window_bounds = array<i64: 16, 32>}, {transform_indices = @transform_1, window_bounds = array<i64: 32, 16>}, {pipeline_mode = #tpu.pipeline_mode<synchronous>, transform_indices = @transform_2, window_bounds = array<i64: 1, 16>}, {transform_indices = @transform_3, window_bounds = array<i64: 16, 16>}]} {
    %c0_i32 = arith.constant 0 : i32
    %0 = arith.cmpi eq, %arg1, %c0_i32 : i32
    %1 = arith.extui %0 : i1 to i32
    %c0_i32_0 = arith.constant 0 : i32
    %2 = arith.cmpi ne, %1, %c0_i32_0 : i32
    scf.if %2 {
      %cst_10 = arith.constant 0.000000e+00 : f32
      %13 = vector.broadcast %cst_10 : f32 to vector<16x16xf32>
      %c0_11 = arith.constant 0 : index
      %c0_12 = arith.constant 0 : index
      %14 = vector.load %arg6[%c0_11, %c0_12] : memref<16x16xf32, #tpu.memory_space<vmem>>, vector<16x16xf32>
      tpu.vector_store %arg6[%c0_11, %c0_12], %13 {strides = array<i32>} : memref<16x16xf32, #tpu.memory_space<vmem>>, vector<16x16xf32>,
    } else {
    }
    %c0 = arith.constant 0 : index
    %c0_1 = arith.constant 0 : index
    %3 = vector.load %arg6[%c0, %c0_1] : memref<16x16xf32, #tpu.memory_space<vmem>>, vector<16x16xf32>
    %c0_2 = arith.constant 0 : index
    %c0_3 = arith.constant 0 : index
    %4 = vector.load %arg2[%c0_2, %c0_3] : memref<16x32xf32, #tpu.memory_space<vmem>>, vector<16x32xf32>
    %5 = arith.truncf %4 : vector<16x32xf32> to vector<16x32xbf16>
    %c0_4 = arith.constant 0 : index
    %c0_5 = arith.constant 0 : index
    %6 = vector.load %arg3[%c0_4, %c0_5] : memref<32x16xbf16, #tpu.memory_space<vmem>>, vector<32x16xbf16>
    %cst = arith.constant dense<0.000000e+00> : vector<16x16xf32>
    %7 = tpu.matmul %5, %6, %cst {dimension_numbers = #tpu.dot_dimension_numbers<[1], [0], [0], [1], [0, 0, 1, 1], [], []>} : vector<16x32xbf16>, vector<32x16xbf16>, vector<16x16xf32> -> vector<16x16xf32>
    %8 = arith.addf %3, %7 : vector<16x16xf32>
    %c0_6 = arith.constant 0 : index
    %c0_7 = arith.constant 0 : index
    %9 = vector.load %arg6[%c0_6, %c0_7] : memref<16x16xf32, #tpu.memory_space<vmem>>, vector<16x16xf32>
    tpu.vector_store %arg6[%c0_6, %c0_7], %8 {strides = array<i32>} : memref<16x16xf32, #tpu.memory_space<vmem>>, vector<16x16xf32>,
    %c0_i32_8 = arith.constant 0 : i32
    %10 = arith.cmpi eq, %arg1, %c0_i32_8 : i32
    %11 = arith.extui %10 : i1 to i32
    %c0_i32_9 = arith.constant 0 : i32
    %12 = arith.cmpi ne, %11, %c0_i32_9 : i32
    scf.if %12 {
      %c0_10 = arith.constant 0 : index
      %c0_11 = arith.constant 0 : index
      %13 = vector.load %arg6[%c0_10, %c0_11] : memref<16x16xf32, #tpu.memory_space<vmem>>, vector<16x16xf32>
      %c0_12 = arith.constant 0 : index
      %c0_13 = arith.constant 0 : index
      %14 = vector.load %arg4[%c0_12, %c0_13] : memref<1x16xf32, #tpu.memory_space<vmem>>, vector<1x16xf32>
      %15 = vector.broadcast %14 : vector<1x16xf32> to vector<16x16xf32>
      %16 = arith.addf %13, %15 : vector<16x16xf32>
      %cst_14 = arith.constant dense<0xFF800000> : vector<16xf32>
      %17 = vector.multi_reduction <maximumf>, %16, %cst_14 [1] : vector<16x16xf32> to vector<16xf32>
      %18 = vector.shape_cast %17 : vector<16xf32> to vector<16x1xf32>
      %19 = vector.broadcast %18 : vector<16x1xf32> to vector<16x16xf32>
      %20 = arith.subf %16, %19 : vector<16x16xf32>
      %21 = math.exp %20 : vector<16x16xf32>
      %cst_15 = arith.constant dense<0.000000e+00> : vector<16xf32>
      %22 = vector.multi_reduction <add>, %21, %cst_15 [1] : vector<16x16xf32> to vector<16xf32>
      %23 = vector.shape_cast %22 : vector<16xf32> to vector<16x1xf32>
      %24 = math.log %23 : vector<16x1xf32>
      %25 = vector.broadcast %24 : vector<16x1xf32> to vector<16x16xf32>
      %26 = arith.subf %20, %25 : vector<16x16xf32>
      %c0_16 = arith.constant 0 : index
      %c0_17 = arith.constant 0 : index
      %27 = vector.load %arg5[%c0_16, %c0_17] : memref<16x16xf32, #tpu.memory_space<vmem>>, vector<16x16xf32>
      tpu.vector_store %arg5[%c0_16, %c0_17], %26 {strides = array<i32>} : memref<16x16xf32, #tpu.memory_space<vmem>>, vector<16x16xf32>,
    } else {
    }
    return
  }
  func.func @transform_0(%arg0: i32, %arg1: i32) -> (i32, i32) {
    %c0_i32 = arith.constant 0 : i32
    return %arg0, %arg1 : i32, i32
  }
  func.func @transform_1(%arg0: i32, %arg1: i32) -> (i32, i32) {
    %c0_i32 = arith.constant 0 : i32
    %c0_i32_0 = arith.constant 0 : i32
    return %arg1, %c0_i32 : i32, i32
  }
  func.func @transform_2(%arg0: i32, %arg1: i32) -> (i32, i32) {
    %c0_i32 = arith.constant 0 : i32
    %c0_i32_0 = arith.constant 0 : i32
    %c0_i32_1 = arith.constant 0 : i32
    return %c0_i32, %c0_i32_0 : i32, i32
  }
  func.func @transform_3(%arg0: i32, %arg1: i32) -> (i32, i32) {
    %c0_i32 = arith.constant 0 : i32
    %c0_i32_0 = arith.constant 0 : i32
    return %arg0, %c0_i32 : i32, i32
  }
}

</mosaic_0001>

<bundles_post_ra>
// kernel: transformer_forward.53
= control target key start
LH: loop header
LB: loop body
LE: loop exit
PB: predicated region body
PF: predicated region fallthrough
CT: control target
= control target key end

     0   :  { %vm16_vm0 = vcmask 261120   ;;  %s118_s0 = inlined_call_operand.vmem [shape: f32[16,32], index: 0, kind: input, shape index: {}]   ;;  %s119_s1 = inlined_call_operand.vmem [shape: f32[1,32], index: 1, kind: input, shape index: {}]   ;;  %s120_s2 = inlined_call_operand.vmem [shape: f32[1,32], index: 2, kind: input, shape index: {}]   ;;  %s121_s3 = inlined_call_operand.vmem [shape: f32[16,32], index: 3, kind: output, shape index: {}]  }
   0x1   :  { %v14_v0 = vld [vmem:[%s118_s0] sm:$0xff]  ;;  %v15_v1 = vld [vmem:[%s118_s0 + $0x8] sm:$0xff] }
   0x2   :  { %v17_v2 = vsel %vm16_vm0, %v14_v0, 0.0  ;;  %v20_v3 = vsel %vm16_vm0, %v15_v1, 0.0  ;;  %v68_v21 = vld [vmem:[%s119_s1] ss:$0 sm:$0xff] }
   0x3   :  { %18 = vadd.xlane.f32.xlu0 %v17_v2  ;;  %v69_v23 = vld [vmem:[%s120_s2] ss:$0 sm:$0xff] }
   0x7   :  { %21 = vadd.xlane.f32.xlu0 %v20_v3 }
  0x8c   :  { %v19_v4 = vpop.xlane.xlu0 %18 }
  0x8d   :  { %v24_v5 = vmul.f32 0.03125, %v19_v4 }
  0x8f   :  { %v26_v6 = vsub.f32 %v14_v0, %v24_v5 }
  0x90   :  { %v22_v7 = vpop.xlane.xlu0 %21 }
  0x91   :  { %v25_v8 = vmul.f32 0.03125, %v22_v7  ;;  %v28_v9 = vmul.f32 %v26_v6, %v26_v6 }
  0x93   :  { %v27_v10 = vsub.f32 %v15_v1, %v25_v8  ;;  %v30_v11 = vsel %vm16_vm0, %v28_v9, 0.0 }
  0x94   :  { %31 = vadd.xlane.f32.xlu1 %v30_v11 }
  0x95   :  { %v29_v12 = vmul.f32 %v27_v10, %v27_v10 }
  0x97   :  { %v33_v13 = vsel %vm16_vm0, %v29_v12, 0.0 }
  0x98   :  { %34 = vadd.xlane.f32.xlu1 %v33_v13 }
 0x11d   :  { %v32_v14 = vpop.xlane.xlu1 %31 }
 0x11e   :  { %v36_v15 = vmul.f32 0.03125, %v32_v14 }
 0x120   :  { %v38_v16 = vadd.f32 1e-05, %v36_v15 }
 0x121   :  { %v35_v17 = vpop.xlane.xlu1 %34 }
 0x122   :  { %70 = vrsqrt.f32 %v38_v16  ;;  %v37_v18 = vmul.f32 0.03125, %v35_v17 }
 0x124   :  { %v39_v19 = vadd.f32 1e-05, %v37_v18 }
 0x126   :  { %72 = vrsqrt.f32 %v39_v19 }
 0x12f   :  { %v71_v20 = vpop.eup %70 }
 0x130   :  { %v42_v22 = vmul.f32 %v71_v20, %v26_v6 }
 0x132   :  { %v51_v24 = vmul.f32 %v68_v21, %v42_v22 }
 0x133   :  { %v73_v25 = vpop.eup %72 }
 0x134   :  { %v60_v26 = vadd.f32 %v69_v23, %v51_v24  ;;  %v43_v27 = vmul.f32 %v73_v25, %v27_v10 }
 0x136   :  { %62 = vst.msk [vmem:[%s121_s3] sm:$0xff] %vm16_vm0, %v60_v26  ;;  %v52_v28 = vmul.f32 %v68_v21, %v43_v27 }
 0x138   :  { %v61_v29 = vadd.f32 %v69_v23, %v52_v28 }
 0x13a   :  { %63 = vst.msk [vmem:[%s121_s3 + $0x8] sm:$0xff] %vm16_vm0, %v61_v29 }

// kernel: transformer_forward.55
= control target key start
LH: loop header
LB: loop body
LE: loop exit
PB: predicated region body
PF: predicated region fallthrough
CT: control target
= control target key end

     0   :  { %vm19_vm0 = vcmask 785408   ;;  %v132_v0 = vmov 0.0   ;;  %vm133_vm1 = vmmov 0   ;;  %vm43_vm2 = vcmask 261120   ;;  %s181_s1 = inlined_call_operand.vmem [shape: bf16[32,96], index: 1, kind: input, shape index: {}]   ;;  %s182_s0 = inlined_call_operand.vmem [shape: f32[16,32], index: 0, kind: input, shape index: {}]   ;;  %s183_s2 = inlined_call_operand.vmem [shape: f32[1,96], index: 2, kind: input, shape index: {}]   ;;  %s184_s3 = inlined_call_operand.vmem [shape: f32[16,96], index: 3, kind: output, shape index: {}]  }
   0x1   :  { %120 = vmatprep.subr.bf16.mxu0 %v132_v0  ;;  %v130_v1 = vld [vmem:[%s181_s1 + $0x8] sm:$0xff]   ;;  %124 = vmatprep.mubr.msk.bf16.mxu0 %vm133_vm1, %v132_v0  ;;  %20 = vst.msk [vmem:[#allocation2] sm:$0xff] %vm19_vm0, %v132_v0  ;;  %21 = vst.msk [vmem:[#allocation2 + $0x8] sm:$0xff] %vm19_vm0, %v132_v0  ;;  %v131_v2 = vld [vmem:[%s181_s1] sm:$0xff]  }
   0x2   :  { %121 = vmatpush3.bf16.msra.mxu0 %v130_v1  ;;  %v24_v3 = vld [vmem:[%s182_s0] sm:$0xff]  ;;  %v25_v4 = vld [vmem:[%s182_s0 + $0x8] sm:$0xff] }
   0x3   :  { %122 = vmatprep.subr.bf16.mxu0 %v132_v0  ;;  %v26_v5 = vpack.c.bf16 %v25_v4, %v24_v3  ;;  %v116_v14 = vld [vmem:[%s183_s2] ss:$0 sm:$0xff] }
   0x6   :  { %123 = vmatpush3.bf16.msra.mxu0 %v131_v2 }
   0x8   :  { %v22_v6 = vld [vmem:[#allocation2] sm:$0xff]  ;;  %v23_v10 = vld [vmem:[#allocation2 + $0x8] sm:$0xff] }
   0x9   :  { %125 = vmatmul.mubr.msk.bf16.vlgmr.msra.gmra.mxu0 %vm43_vm2, %v26_v5 }
  0xc9   :  { %v81_v7 = vpop.f32.mrf.mxu0 }
  0xca   :  { %v88_v8 = vadd.f32 %v81_v7, %v22_v6 }
  0xcb   :  { %v126_v9 = vpop.f32.mrf.mxu0 }
  0xcc   :  { %91 = vst.msk [vmem:[#allocation2] sm:$0xff] %vm19_vm0, %v88_v8 }
  0xcd   :  { %v84_v11 = vpop.f32.mrf.mxu0 }
  0xce   :  { %v89_v12 = vadd.f32 %v84_v11, %v23_v10 }
  0xcf   :  { %v127_v13 = vpop.f32.mrf.mxu0 }
  0xd0   :  { %92 = vst.msk [vmem:[#allocation2 + $0x8] sm:$0xff] %vm19_vm0, %v89_v12 }
  0xd3   :  { %v96_v15 = vld [vmem:[#allocation2] sm:$0xff] }
  0xd4   :  { %v105_v16 = vadd.f32 %v116_v14, %v96_v15 }
  0xd6   :  { %107 = vst.msk [vmem:[%s184_s3] sm:$0xff] %vm19_vm0, %v105_v16 }
  0xd7   :  { %v97_v17 = vld [vmem:[#allocation2 + $0x8] sm:$0xff] }
  0xd8   :  { %v106_v18 = vadd.f32 %v116_v14, %v97_v17 }
  0xda   :  { %108 = vst.msk [vmem:[%s184_s3 + $0x8] sm:$0xff] %vm19_vm0, %v106_v18 }

// kernel: transformer_forward.57
= control target key start
LH: loop header
LB: loop body
LE: loop exit
PB: predicated region body
PF: predicated region fallthrough
CT: control target
= control target key end

     0   :  { %vm19_vm0 = vcmask 261120   ;;  %v131_v0 = vmov 0.0   ;;  %vm132_vm1 = vmmov 0   ;;  %s181_s1 = inlined_call_operand.vmem [shape: bf16[32,32], index: 1, kind: input, shape index: {}]   ;;  %s182_s0 = inlined_call_operand.vmem [shape: f32[16,32], index: 0, kind: input, shape index: {}]   ;;  %s183_s2 = inlined_call_operand.vmem [shape: f32[1,32], index: 2, kind: input, shape index: {}]   ;;  %s184_s3 = inlined_call_operand.vmem [shape: f32[16,32], index: 3, kind: output, shape index: {}]  }
   0x1   :  { %119 = vmatprep.subr.bf16.mxu0 %v131_v0  ;;  %v129_v1 = vld [vmem:[%s181_s1 + $0x8] sm:$0xff]   ;;  %123 = vmatprep.mubr.msk.bf16.mxu0 %vm132_vm1, %v131_v0  ;;  %20 = vst.msk [vmem:[#allocation2] sm:$0xff] %vm19_vm0, %v131_v0  ;;  %21 = vst.msk [vmem:[#allocation2 + $0x8] sm:$0xff] %vm19_vm0, %v131_v0  ;;  %v130_v2 = vld [vmem:[%s181_s1] sm:$0xff]  }
   0x2   :  { %120 = vmatpush3.bf16.msra.mxu0 %v129_v1  ;;  %v24_v3 = vld [vmem:[%s182_s0] sm:$0xff]  ;;  %v25_v4 = vld [vmem:[%s182_s0 + $0x8] sm:$0xff] }
   0x3   :  { %121 = vmatprep.subr.bf16.mxu0 %v131_v0  ;;  %v26_v5 = vpack.c.bf16 %v25_v4, %v24_v3  ;;  %v115_v14 = vld [vmem:[%s183_s2] ss:$0 sm:$0xff] }
   0x6   :  { %122 = vmatpush3.bf16.msra.mxu0 %v130_v2 }
   0x8   :  { %v22_v6 = vld [vmem:[#allocation2] sm:$0xff]  ;;  %v23_v10 = vld [vmem:[#allocation2 + $0x8] sm:$0xff] }
   0x9   :  { %124 = vmatmul.mubr.msk.bf16.vlgmr.msra.gmra.mxu0 %vm19_vm0, %v26_v5 }
  0xc9   :  { %v81_v7 = vpop.f32.mrf.mxu0 }
  0xca   :  { %v88_v8 = vadd.f32 %v81_v7, %v22_v6 }
  0xcb   :  { %v125_v9 = vpop.f32.mrf.mxu0 }
  0xcc   :  { %90 = vst.msk [vmem:[#allocation2] sm:$0xff] %vm19_vm0, %v88_v8 }
  0xcd   :  { %v84_v11 = vpop.f32.mrf.mxu0 }
  0xce   :  { %v89_v12 = vadd.f32 %v84_v11, %v23_v10 }
  0xcf   :  { %v126_v13 = vpop.f32.mrf.mxu0 }
  0xd0   :  { %91 = vst.msk [vmem:[#allocation2 + $0x8] sm:$0xff] %vm19_vm0, %v89_v12 }
  0xd3   :  { %v95_v15 = vld [vmem:[#allocation2] sm:$0xff] }
  0xd4   :  { %v104_v16 = vadd.f32 %v115_v14, %v95_v15 }
  0xd6   :  { %106 = vst.msk [vmem:[%s184_s3] sm:$0xff] %vm19_vm0, %v104_v16 }
  0xd7   :  { %v96_v17 = vld [vmem:[#allocation2 + $0x8] sm:$0xff] }
  0xd8   :  { %v105_v18 = vadd.f32 %v115_v14, %v96_v17 }
  0xda   :  { %107 = vst.msk [vmem:[%s184_s3 + $0x8] sm:$0xff] %vm19_vm0, %v105_v18 }

// kernel: transformer_forward.56
= control target key start
LH: loop header
LB: loop body
LE: loop exit
PB: predicated region body
PF: predicated region fallthrough
CT: control target
= control target key end

     0   :  { %s1164_s15 = smov 0   ;;  %s1252_s0 = inlined_call_operand.vmem [shape: f32[2,4,8,8], index: 0, kind: input, shape index: {}]   ;;  %s1253_s1 = inlined_call_operand.vmem [shape: f32[2,4,8,8], index: 1, kind: input, shape index: {}]   ;;  %s1254_s2 = inlined_call_operand.vmem [shape: f32[2,4,8,8], index: 2, kind: input, shape index: {}]   ;;  %s1255_s3 = inlined_call_operand.vmem [shape: f32[2,8,8], index: 3, kind: input, shape index: {}]   ;;  %s1256_s4 = inlined_call_operand.vmem [shape: f32[2,4,8,8], index: 4, kind: output, shape index: {}]  }
   0x1 LB: > { %s1015_s16 = sadd.s32 4294967295, %s1135_s15   ;;  %p1019_p0 = scmp.ge.s32.totalorder %s1135_s15, 1  ;;  %s1135_s15 = sphi %s1164_s15, %s14_s15  }
   0x2   : > { %p191_p1 = scmp.lt.s32.totalorder %s1135_s15, 3 }
   0x4   : > { %p192_p2 = pnand %p1019_p0, %p191_p1 }
   0x5   : > { %p231_p3 = scmp.lt.s32.totalorder (!%p192_p2), %s1015_s16, 1 }
   0x6   : > { %195 = sbr.rel (%p192_p2) target bundleno = 729 (0x2d9), region = 36 }
   0xb   : > { %v1137_v0 = vmov 0.0   ;;  %vm1138_vm0 = vmmov 0   ;;  %s1258_s16 = smov (!%p231_p3, %s1015_s16), 1  ;;  %vm268_vm1 = vcmask 64512  }
   0xc   : > { %1063 = vmatprep.subr.mxu0 %v1137_v0  ;;  %1065 = vmatprep.mubr.msk.f32.mxu0 %vm1138_vm0, %v1137_v0  ;;  %s1181_s17 = sshll.u32 %s1258_s16, 5  ;;  %s1026_s24 = sshll.u32 %s1258_s16, 3 }
   0xd   : > { %1068 = vmatprep.subr.mxu1 %v1137_v0  ;;  %1070 = vmatprep.mubr.msk.f32.mxu1 %vm1138_vm0, %v1137_v0  ;;  %s240_s20 = scalar_lea.vmem %s1253_s1, %s1181_s17  ;;  %s235_s23 = scalar_lea.vmem %s1252_s0, %s1181_s17 }
   0xe   : > { %v259_v1 = vld [vmem:[%s240_s20] sm:$0xff]  ;;  %v260_v2 = vld [vmem:[%s240_s20 + $0x8] sm:$0xff]  ;;  %v261_v5 = vld [vmem:[%s240_s20 + $0x10] sm:$0xff]  ;;  %s249_s27 = scalar_lea.vmem %s1255_s3, %s1026_s24  ;;  %s245_s30 = scalar_lea.vmem %s1254_s2, %s1181_s17 }
   0xf   : > { %1064 = vmatpush3.xpose.msk.msra.mxu0 %vm268_vm1, %v259_v1  ;;  %v255_v3 = vld [vmem:[%s235_s23] sm:$0xff]  ;;  %1069 = vmatpush3.xpose.msk.msra.mxu1 %vm268_vm1, %v260_v2  ;;  %v256_v4 = vld [vmem:[%s235_s23 + $0x8] sm:$0xff]  ;;  %v262_v6 = vld [vmem:[%s240_s20 + $0x18] sm:$0xff]  ;;  %s254_s7 = scalar_lea.vmem %s1256_s4, %s1181_s17 }
  0x10   : > { %1073 = vmatprep.subr.mxu0 %v1137_v0  ;;  %1078 = vmatprep.subr.mxu1 %v1137_v0  ;;  %v257_v7 = vld [vmem:[%s235_s23 + $0x10] sm:$0xff]  ;;  %v258_v8 = vld [vmem:[%s235_s23 + $0x18] sm:$0xff]  ;;  %v267_v9 = vld [vmem:[%s249_s27] sm:$0xff] }
  0x11   : > { %vm577_vm2 = vcmp.gt.f32.partialorder %v267_v9, 0.5  ;;  %v263_v50 = vld [vmem:[%s245_s30] sm:$0xff]  ;;  %v264_v51 = vld [vmem:[%s245_s30 + $0x8] sm:$0xff]  ;;  %v265_v58 = vld [vmem:[%s245_s30 + $0x10] sm:$0xff] }
  0x12   : > { %1066 = vmatmul.mubr.msk.f32.vlgmr.msra.gmra.mxu0 %vm268_vm1, %v255_v3  ;;  %1071 = vmatmul.mubr.msk.f32.vlgmr.msra.gmra.mxu1 %vm268_vm1, %v256_v4  ;;  %v266_v62 = vld [vmem:[%s245_s30 + $0x18] sm:$0xff] }
  0x13   : > { %1074 = vmatpush3.xpose.msk.msra.mxu0 %vm268_vm1, %v261_v5  ;;  %1075 = vmatprep.mubr.msk.f32.mxu0 %vm1138_vm0, %v1137_v0 }
  0x14   : > { %1079 = vmatpush3.xpose.msk.msra.mxu1 %vm268_vm1, %v262_v6  ;;  %1080 = vmatprep.mubr.msk.f32.mxu1 %vm1138_vm0, %v1137_v0 }
  0x15   : > { %1083 = vmatprep.subr.mxu0 %v1137_v0  ;;  %1088 = vmatprep.subr.mxu1 %v1137_v0 }
  0x16   : > { %1076 = vmatmul.mubr.msk.f32.vlgmr.msra.gmra.mxu0 %vm268_vm1, %v257_v7 }
  0x17   : > { %1081 = vmatmul.mubr.msk.f32.vlgmr.msra.gmra.mxu1 %vm268_vm1, %v258_v8  ;;  %1085 = vmatprep.mubr.msk.f32.mxu0 %vm1138_vm0, %v1137_v0 }
  0x18   : > { %1090 = vmatprep.mubr.msk.f32.mxu1 %vm1138_vm0, %v1137_v0  ;;  %1084 = vmatpush3.msra.mxu0 %v263_v50 }
  0x19   : > { %1093 = vmatprep.subr.mxu0 %v1137_v0  ;;  %1089 = vmatpush3.msra.mxu1 %v264_v51 }
  0x1a   : > { %1098 = vmatprep.subr.mxu1 %v1137_v0 }
  0xd2   : > { %v341_v10 = vpop.f32.mrf.mxu0  ;;  %v417_v11 = vpop.f32.mrf.mxu1 }
  0xd3   : > { %v573_v12 = vmul.f32 0.35355338, %v341_v10  ;;  %v574_v13 = vmul.f32 0.35355338, %v417_v11 }
  0xd4   : > { %v1067_v14 = vpop.f32.mrf.mxu0  ;;  %v1072_v15 = vpop.f32.mrf.mxu1 }
  0xd5   : > { %v580_v16 = vsel %vm577_vm2, -3.4028235e+38, %v573_v12  ;;  %v581_v17 = vsel %vm577_vm2, -3.4028235e+38, %v574_v13 }
  0xd6   : > { %v493_v18 = vpop.f32.mrf.mxu0  ;;  %v584_v19 = vsel %vm268_vm1, %v580_v16, -inf  ;;  %v587_v24 = vsel %vm268_vm1, %v581_v17, -inf }
  0xd7   : > { %v575_v20 = vmul.f32 0.35355338, %v493_v18  ;;  %585 = vmax.xlane.f32.xlu0 %v584_v19  ;;  %v569_v21 = vpop.f32.mrf.mxu1 }
  0xd8   : > { %v1077_v22 = vpop.f32.mrf.mxu0  ;;  %v576_v23 = vmul.f32 0.35355338, %v569_v21 }
  0xd9   : > { %v1082_v25 = vpop.f32.mrf.mxu1  ;;  %v582_v26 = vsel %vm577_vm2, -3.4028235e+38, %v575_v20 }
  0xda   : > { %v590_v27 = vsel %vm268_vm1, %v582_v26, -inf  ;;  %v583_v28 = vsel %vm577_vm2, -3.4028235e+38, %v576_v23 }
  0xdb   : > { %588 = vmax.xlane.f32.xlu0 %v587_v24  ;;  %591 = vmax.xlane.f32.xlu1 %v590_v27  ;;  %v593_v29 = vsel %vm268_vm1, %v583_v28, -inf }
  0xdf   : > { %594 = vmax.xlane.f32.xlu1 %v593_v29 }
 0x160   : > { %v586_v30 = vpop.xlane.xlu0 %585 }
 0x161   : > { %v596_v31 = vsub.f32 %v580_v16, %v586_v30 }
 0x163   : > { %v600_v32 = vmul.f32 1.442695, %v596_v31 }
 0x164   : > { %v589_v33 = vpop.xlane.xlu0 %588  ;;  %v592_v34 = vpop.xlane.xlu1 %591 }
 0x165   : > { %1113 = vpow2.f32 %v600_v32  ;;  %v597_v35 = vsub.f32 %v581_v17, %v589_v33  ;;  %v598_v36 = vsub.f32 %v582_v26, %v592_v34 }
 0x167   : > { %v602_v37 = vmul.f32 1.442695, %v597_v35  ;;  %v604_v38 = vmul.f32 1.442695, %v598_v36 }
 0x168   : > { %v595_v39 = vpop.xlane.xlu1 %594 }
 0x169   : > { %1115 = vpow2.f32 %v602_v37  ;;  %v599_v40 = vsub.f32 %v583_v28, %v595_v39 }
 0x16a   : > { %1117 = vpow2.f32 %v604_v38 }
 0x16b   : > { %v606_v41 = vmul.f32 1.442695, %v599_v40 }
 0x16d   : > { %1119 = vpow2.f32 %v606_v41 }
 0x172   : > { %v1114_v42 = vpop.eup %1113 }
 0x173   : > { %v608_v43 = vsel %vm268_vm1, %v1114_v42, 0.0 }
 0x174   : > { %609 = vadd.xlane.f32.xlu0 %v608_v43 }
 0x176   : > { %v1116_v44 = vpop.eup %1115 }
 0x177   : > { %v1118_v45 = vpop.eup %1117  ;;  %v611_v46 = vsel %vm268_vm1, %v1116_v44, 0.0 }
 0x178   : > { %612 = vadd.xlane.f32.xlu1 %v611_v46  ;;  %v614_v47 = vsel %vm268_vm1, %v1118_v45, 0.0 }
 0x179   : > { %615 = vadd.xlane.f32.xlu0 %v614_v47 }
 0x17a   : > { %v1120_v48 = vpop.eup %1119 }
 0x17b   : > { %v617_v49 = vsel %vm268_vm1, %v1120_v48, 0.0 }
 0x17c   : > { %618 = vadd.xlane.f32.xlu1 %v617_v49 }
 0x1fd   : > { %v610_v52 = vpop.xlane.xlu0 %609 }
 0x1fe   : > { %1121 = vrcp.f32 %v610_v52 }
 0x201   : > { %v613_v53 = vpop.xlane.xlu1 %612 }
 0x202   : > { %v616_v54 = vpop.xlane.xlu0 %615  ;;  %1123 = vrcp.f32 %v613_v53 }
 0x203   : > { %1125 = vrcp.f32 %v616_v54 }
 0x205   : > { %v619_v55 = vpop.xlane.xlu1 %618 }
 0x206   : > { %1127 = vrcp.f32 %v619_v55 }
 0x20b   : > { %v1122_v56 = vpop.eup %1121 }
 0x20c   : > { %v621_v57 = vmul.f32 %v1122_v56, %v1114_v42 }
 0x20e   : > { %1086 = vmatmul.mubr.msk.f32.vlgmr.msra.gmra.mxu0 %vm268_vm1, %v621_v57 }
 0x20f   : > { %v1124_v59 = vpop.eup %1123  ;;  %1094 = vmatpush3.msra.mxu0 %v265_v58  ;;  %1095 = vmatprep.mubr.msk.f32.mxu0 %vm1138_vm0, %v1137_v0 }
 0x210   : > { %v1126_v60 = vpop.eup %1125  ;;  %v623_v61 = vmul.f32 %v1124_v59, %v1116_v44 }
 0x211   : > { %v625_v63 = vmul.f32 %v1126_v60, %v1118_v45 }
 0x212   : > { %1091 = vmatmul.mubr.msk.f32.vlgmr.msra.gmra.mxu1 %vm268_vm1, %v623_v61 }
 0x213   : > { %v1128_v1 = vpop.eup %1127  ;;  %1096 = vmatmul.mubr.msk.f32.vlgmr.msra.gmra.mxu0 %vm268_vm1, %v625_v63  ;;  %1099 = vmatpush3.msra.mxu1 %v266_v62 }
 0x214   : > { %1100 = vmatprep.mubr.msk.f32.mxu1 %vm1138_vm0, %v1137_v0  ;;  %v627_v2 = vmul.f32 %v1128_v1, %v1120_v48 }
 0x216   : > { %1101 = vmatmul.mubr.msk.f32.vlgmr.msra.gmra.mxu1 %vm268_vm1, %v627_v2 }
 0x2ce   : > { %v697_v3 = vpop.f32.mrf.mxu0 }
 0x2cf   : > { %920 = vst.msk [vmem:[%s254_s7] sm:$0xff] %vm268_vm1, %v697_v3 }
 0x2d0   : > { %v1087_v4 = vpop.f32.mrf.mxu0 }
 0x2d2   : > { %v770_v5 = vpop.f32.mrf.mxu1 }
 0x2d3   : > { %921 = vst.msk [vmem:[%s254_s7 + $0x8] sm:$0xff] %vm268_vm1, %v770_v5  ;;  %v843_v6 = vpop.f32.mrf.mxu0 }
 0x2d4   : > { %922 = vst.msk [vmem:[%s254_s7 + $0x10] sm:$0xff] %vm268_vm1, %v843_v6  ;;  %v1092_v7 = vpop.f32.mrf.mxu1 }
 0x2d5   : > { %v1097_v8 = vpop.f32.mrf.mxu0 }
 0x2d6   : > { %v916_v0 = vpop.f32.mrf.mxu1 }
 0x2d7   : > { %923 = vst.msk [vmem:[%s254_s7 + $0x18] sm:$0xff] %vm268_vm1, %v916_v0 }
 0x2d8   : > { %v1102_v9 = vpop.f32.mrf.mxu1 }
 0x2d9 PF: > { %s14_s15 = sadd.s32 1, %s1135_s15  }
 0x2da   : > { %p11_p4 = scmp.ge.s32.totalorder %s14_s15, 4  }
 0x2dc   :  { %13 = sbr.rel (!%p11_p4) target bundleno = 1 (0x1), region = 75 }

// kernel: transformer_forward.45
= control target key start
LH: loop header
LB: loop body
LE: loop exit
PB: predicated region body
PF: predicated region fallthrough
CT: control target
= control target key end

     0   :  { %v231_v0 = vmov 0.0   ;;  %vm232_vm0 = vmmov 0   ;;  %vm47_vm1 = vcmask 261120   ;;  %vm134_vm2 = vcmask 523264   ;;  %s302_s1 = inlined_call_operand.vmem [shape: bf16[32,64], index: 1, kind: input, shape index: {}]   ;;  %s303_s0 = inlined_call_operand.vmem [shape: f32[16,32], index: 0, kind: input, shape index: {}]   ;;  %s304_s3 = inlined_call_operand.vmem [shape: bf16[64,32], index: 3, kind: input, shape index: {}]   ;;  %s305_s2 = inlined_call_operand.vmem [shape: f32[1,64], index: 2, kind: input, shape index: {}]   ;;  %s306_s4 = inlined_call_operand.vmem [shape: f32[1,32], index: 4, kind: input, shape index: {}]   ;;  %s307_s5 = inlined_call_operand.vmem [shape: f32[16,32], index: 5, kind: output, shape index: {}]  }
   0x1   :  { %203 = vmatprep.subr.bf16.mxu0 %v231_v0  ;;  %v225_v1 = vld [vmem:[%s302_s1 + $0x8] sm:$0xff]   ;;  %207 = vmatprep.mubr.msk.bf16.mxu0 %vm232_vm0, %v231_v0  ;;  %v226_v2 = vld [vmem:[%s302_s1] sm:$0xff]   ;;  %v227_v5 = vld [vmem:[%s304_s3 + $0x18] sm:$0xff]  }
   0x2   :  { %211 = vmatprep.subr.bf16.mxu1 %v231_v0  ;;  %219 = vmatprep.mubr.msk.bf16.mxu1 %vm232_vm0, %v231_v0  ;;  %v21_v3 = vld [vmem:[%s303_s0] sm:$0xff]  ;;  %v22_v4 = vld [vmem:[%s303_s0 + $0x8] sm:$0xff]  ;;  %v228_v7 = vld [vmem:[%s304_s3 + $0x10] sm:$0xff]  }
   0x3   :  { %204 = vmatpush3.bf16.msra.mxu0 %v225_v1  ;;  %v23_v6 = vpack.c.bf16 %v22_v4, %v21_v3  ;;  %212 = vmatpush3.bf16.msra.mxu1 %v227_v5  ;;  %v229_v8 = vld [vmem:[%s304_s3 + $0x8] sm:$0xff]   ;;  %v230_v9 = vld [vmem:[%s304_s3] sm:$0xff]  }
   0x4   :  { %205 = vmatprep.subr.bf16.mxu0 %v231_v0  ;;  %213 = vmatprep.subr.bf16.mxu1 %v231_v0  ;;  %v185_v10 = vld [vmem:[%s305_s2] ss:$0 sm:$0xff] }
   0x5   :  { %v189_v20 = vld [vmem:[%s306_s4] ss:$0 sm:$0xff] }
   0x7   :  { %206 = vmatpush3.bf16.msra.mxu0 %v226_v2  ;;  %214 = vmatpush3.bf16.msra.mxu1 %v228_v7 }
   0x8   :  { %215 = vmatprep.subr.bf16.mxu1 %v231_v0 }
   0xa   :  { %208 = vmatmul.mubr.msk.bf16.vlgmr.msra.gmra.mxu0 %vm47_vm1, %v23_v6 }
   0xb   :  { %216 = vmatpush3.bf16.msra.mxu1 %v229_v8 }
   0xc   :  { %217 = vmatprep.subr.bf16.mxu1 %v231_v0 }
   0xf   :  { %218 = vmatpush3.bf16.msra.mxu1 %v230_v9 }
  0xca   :  { %v85_v11 = vpop.f32.mrf.mxu0 }
  0xcb   :  { %v86_v13 = vadd.f32 %v185_v10, %v85_v11 }
  0xcc   :  { %v209_v12 = vpop.f32.mrf.mxu0 }
  0xcd   :  { %v92_v17 = vmax.f32 %v86_v13, 0.0 }
  0xce   :  { %v88_v14 = vpop.f32.mrf.mxu0 }
  0xcf   :  { %v89_v15 = vadd.f32 %v185_v10, %v88_v14 }
  0xd0   :  { %v210_v16 = vpop.f32.mrf.mxu0 }
  0xd1   :  { %v93_v18 = vmax.f32 %v89_v15, 0.0 }
  0xd3   :  { %v94_v19 = vpack.c.bf16 %v93_v18, %v92_v17 }
  0xd5   :  { %220 = vmatmul.mubr.msk.bf16.vlgmr.msra.gmra.mxu1 %vm134_vm2, %v94_v19 }
 0x195   :  { %v172_v21 = vpop.f32.mrf.mxu1 }
 0x196   :  { %v173_v22 = vadd.f32 %v189_v20, %v172_v21 }
 0x197   :  { %v221_v23 = vpop.f32.mrf.mxu1 }
 0x198   :  { %179 = vst.msk [vmem:[%s307_s5] sm:$0xff] %vm47_vm1, %v173_v22 }
 0x199   :  { %v175_v24 = vpop.f32.mrf.mxu1 }
 0x19a   :  { %v176_v25 = vadd.f32 %v189_v20, %v175_v24 }
 0x19b   :  { %v222_v26 = vpop.f32.mrf.mxu1 }
 0x19c   :  { %180 = vst.msk [vmem:[%s307_s5 + $0x8] sm:$0xff] %vm47_vm1, %v176_v25 }

// kernel: transformer_forward.60
= control target key start
LH: loop header
LB: loop body
LE: loop exit
PB: predicated region body
PF: predicated region fallthrough
CT: control target
= control target key end

     0   :  { %vm19_vm0 = vcmask 523264   ;;  %v132_v0 = vmov 0.0   ;;  %vm133_vm1 = vmmov 0   ;;  %vm43_vm2 = vcmask 261120   ;;  %s181_s1 = inlined_call_operand.vmem [shape: bf16[32,64], index: 1, kind: input, shape index: {}]   ;;  %s182_s0 = inlined_call_operand.vmem [shape: f32[16,32], index: 0, kind: input, shape index: {}]   ;;  %s183_s2 = inlined_call_operand.vmem [shape: f32[1,64], index: 2, kind: input, shape index: {}]   ;;  %s184_s3 = inlined_call_operand.vmem [shape: f32[16,64], index: 3, kind: output, shape index: {}]  }
   0x1   :  { %120 = vmatprep.subr.bf16.mxu0 %v132_v0  ;;  %v130_v1 = vld [vmem:[%s181_s1 + $0x8] sm:$0xff]   ;;  %124 = vmatprep.mubr.msk.bf16.mxu0 %vm133_vm1, %v132_v0  ;;  %20 = vst.msk [vmem:[#allocation2] sm:$0xff] %vm19_vm0, %v132_v0  ;;  %21 = vst.msk [vmem:[#allocation2 + $0x8] sm:$0xff] %vm19_vm0, %v132_v0  ;;  %v131_v2 = vld [vmem:[%s181_s1] sm:$0xff]  }
   0x2   :  { %121 = vmatpush3.bf16.msra.mxu0 %v130_v1  ;;  %v24_v3 = vld [vmem:[%s182_s0] sm:$0xff]  ;;  %v25_v4 = vld [vmem:[%s182_s0 + $0x8] sm:$0xff] }
   0x3   :  { %122 = vmatprep.subr.bf16.mxu0 %v132_v0  ;;  %v26_v5 = vpack.c.bf16 %v25_v4, %v24_v3  ;;  %v116_v14 = vld [vmem:[%s183_s2] ss:$0 sm:$0xff] }
   0x6   :  { %123 = vmatpush3.bf16.msra.mxu0 %v131_v2 }
   0x8   :  { %v22_v6 = vld [vmem:[#allocation2] sm:$0xff]  ;;  %v23_v10 = vld [vmem:[#allocation2 + $0x8] sm:$0xff] }
   0x9   :  { %125 = vmatmul.mubr.msk.bf16.vlgmr.msra.gmra.mxu0 %vm43_vm2, %v26_v5 }
  0xc9   :  { %v81_v7 = vpop.f32.mrf.mxu0 }
  0xca   :  { %v88_v8 = vadd.f32 %v81_v7, %v22_v6 }
  0xcb   :  { %v126_v9 = vpop.f32.mrf.mxu0 }
  0xcc   :  { %91 = vst.msk [vmem:[#allocation2] sm:$0xff] %vm19_vm0, %v88_v8 }
  0xcd   :  { %v84_v11 = vpop.f32.mrf.mxu0 }
  0xce   :  { %v89_v12 = vadd.f32 %v84_v11, %v23_v10 }
  0xcf   :  { %v127_v13 = vpop.f32.mrf.mxu0 }
  0xd0   :  { %92 = vst.msk [vmem:[#allocation2 + $0x8] sm:$0xff] %vm19_vm0, %v89_v12 }
  0xd3   :  { %v96_v15 = vld [vmem:[#allocation2] sm:$0xff] }
  0xd4   :  { %v105_v16 = vadd.f32 %v116_v14, %v96_v15 }
  0xd6   :  { %107 = vst.msk [vmem:[%s184_s3] sm:$0xff] %vm19_vm0, %v105_v16 }
  0xd7   :  { %v97_v17 = vld [vmem:[#allocation2 + $0x8] sm:$0xff] }
  0xd8   :  { %v106_v18 = vadd.f32 %v116_v14, %v97_v17 }
  0xda   :  { %108 = vst.msk [vmem:[%s184_s3 + $0x8] sm:$0xff] %vm19_vm0, %v106_v18 }

// kernel: transformer_forward.77
= control target key start
LH: loop header
LB: loop body
LE: loop exit
PB: predicated region body
PF: predicated region fallthrough
CT: control target
= control target key end

     0   :  { %v202_v1 = vmov 0.0   ;;  %vm203_vm0 = vmmov 0   ;;  %vm20_vm1 = vcmask 130048   ;;  %s255_s0 = inlined_call_operand.vmem [shape: f32[16,32], index: 0, kind: input, shape index: {}]   ;;  %s256_s1 = inlined_call_operand.vmem [shape: bf16[32,16], index: 1, kind: input, shape index: {}]   ;;  %s257_s2 = inlined_call_operand.vmem [shape: f32[1,16], index: 2, kind: input, shape index: {}]   ;;  %s258_s3 = inlined_call_operand.hbm [shape: f32[16,16], index: 3, kind: output, shape index: {}]  }
   0x1   :  { %v170_v0 = vld [vmem:[%s256_s1 + $0x8] sm:$0xff]   ;;  %157 = vmatprep.subr.bf16.mxu0 %v202_v1  ;;  %v171_v2 = vld [vmem:[%s256_s1] sm:$0xff]   ;;  %161 = vmatprep.mubr.msk.bf16.mxu0 %vm203_vm0, %v202_v1 }
   0x2   :  { %158 = vmatpush3.bf16.msra.mxu0 %v170_v0  ;;  %v25_v3 = vld [vmem:[%s255_s0] sm:$0xff]  ;;  %v26_v4 = vld [vmem:[%s255_s0 + $0x8] sm:$0xff] }
   0x3   :  { %8 = vsyncpa [#allocation4], 0  ;;  %159 = vmatprep.subr.bf16.mxu0 %v202_v1  ;;  %21 = vst.msk [vmem:[#allocation2] sm:$0xff] %vm20_vm1, %v202_v1  ;;  %v27_v5 = vpack.c.bf16 %v26_v4, %v25_v3  ;;  %vm44_vm2 = vcmask 261120   ;;  %v153_v14 = vld [vmem:[%s257_s2] ss:$0 sm:$0xff] }
   0x4   :  { %22 = vst.msk [vmem:[#allocation2 + $0x8] sm:$0xff] %vm20_vm1, %v202_v1  ;;  %s204_s2 = smov [#allocation3]  }
   0x5   :  { %s139_s20 = sshll.u32 %s204_s2, 4  ;;  %s140_s20 = int_to_ptr.vmem [resolvable:$true] %s139_s20 }
   0x6   :  { %160 = vmatpush3.bf16.msra.mxu0 %v171_v2  ;;  %s180_s21 = scalar_lea.vmem %s140_s20, 256  ;;  %p185_p1 = scmp.lt.s32.totalorder %s140_s20, %s140_s20 }
   0x7   :  { %p181_p0 = scmp.ne.s32.totalorder %s140_s20, %s180_s21  ;;  %p186_p2 = scmp.lt.s32.totalorder %s180_s21, %s180_s21 }
   0x9   :  { %162 = vmatmul.mubr.msk.bf16.vlgmr.msra.gmra.mxu0 %vm44_vm2, %v27_v5  ;;  %p187_p3 = por %p186_p2, %p185_p1 }
   0xa   :  { %v23_v6 = vld [vmem:[#allocation2] sm:$0xff] }
   0xb   :  { %v24_v10 = vld [vmem:[#allocation2 + $0x8] sm:$0xff]  ;;  %p188_p4 = pnand %p187_p3, %p181_p0 }
  0xc9   :  { %v82_v7 = vpop.f32.mrf.mxu0 }
  0xca   :  { %v89_v8 = vadd.f32 %v82_v7, %v23_v6 }
  0xcb   :  { %v163_v9 = vpop.f32.mrf.mxu0 }
  0xcc   :  { %92 = vst.msk [vmem:[#allocation2] sm:$0xff] %vm20_vm1, %v89_v8 }
  0xcd   :  { %v85_v11 = vpop.f32.mrf.mxu0 }
  0xce   :  { %v90_v12 = vadd.f32 %v85_v11, %v24_v10 }
  0xcf   :  { %v164_v13 = vpop.f32.mrf.mxu0 }
  0xd0   :  { %93 = vst.msk [vmem:[#allocation2 + $0x8] sm:$0xff] %vm20_vm1, %v90_v12 }
  0xd3   :  { %v97_v15 = vld [vmem:[#allocation2] sm:$0xff] }
  0xd4   :  { %v106_v16 = vadd.f32 %v153_v14, %v97_v15 }
  0xd6   :  { %v108_v17 = vsel %vm20_vm1, %v106_v16, -inf }
  0xd7   :  { %109 = vmax.xlane.f32.xlu0 %v108_v17  ;;  %v98_v18 = vld [vmem:[#allocation2 + $0x8] sm:$0xff] }
  0xd8   :  { %v107_v19 = vadd.f32 %v153_v14, %v98_v18 }
  0xda   :  { %v111_v20 = vsel %vm20_vm1, %v107_v19, -inf }
  0xdb   :  { %112 = vmax.xlane.f32.xlu0 %v111_v20 }
 0x160   :  { %v110_v21 = vpop.xlane.xlu0 %109 }
 0x161   :  { %v114_v22 = vsub.f32 %v106_v16, %v110_v21 }
 0x163   :  { %v116_v23 = vmul.f32 1.442695, %v114_v22 }
 0x164   :  { %v113_v24 = vpop.xlane.xlu0 %112 }
 0x165   :  { %172 = vpow2.f32 %v116_v23  ;;  %v115_v25 = vsub.f32 %v107_v19, %v113_v24 }
 0x167   :  { %v118_v26 = vmul.f32 1.442695, %v115_v25 }
 0x169   :  { %174 = vpow2.f32 %v118_v26 }
 0x172   :  { %v173_v27 = vpop.eup %172 }
 0x173   :  { %v120_v28 = vsel %vm20_vm1, %v173_v27, 0.0 }
 0x174   :  { %121 = vadd.xlane.f32.xlu1 %v120_v28 }
 0x176   :  { %v175_v29 = vpop.eup %174 }
 0x177   :  { %v123_v30 = vsel %vm20_vm1, %v175_v29, 0.0 }
 0x178   :  { %124 = vadd.xlane.f32.xlu1 %v123_v30 }
 0x1fd   :  { %v122_v31 = vpop.xlane.xlu1 %121 }
 0x1fe   :  { %176 = vlog2.f32 %v122_v31 }
 0x201   :  { %v125_v32 = vpop.xlane.xlu1 %124 }
 0x202   :  { %178 = vlog2.f32 %v125_v32 }
 0x20b   :  { %v177_v33 = vpop.eup %176 }
 0x20c   :  { %v127_v34 = vmul.f32 0.6931472, %v177_v33 }
 0x20e   :  { %v130_v35 = vsub.f32 %v114_v22, %v127_v34 }
 0x20f   :  { %v179_v36 = vpop.eup %178 }
 0x210   :  { %132 = vst.msk [vmem:[#allocation3] sm:$0xff] %vm20_vm1, %v130_v35  ;;  %v129_v37 = vmul.f32 0.6931472, %v179_v36 }
 0x212   :  { %v131_v38 = vsub.f32 %v115_v25, %v129_v37 }
 0x214   :  { %133 = vst.msk [vmem:[#allocation3 + $0x8] sm:$0xff] %vm20_vm1, %v131_v38 }
 0x215   :  { %191 = shalt.err (!%p188_p4)
}
 0x216   :  { %s205_s22 = smov 128   ;;  %s206_s23 = smov 8  }
 0x217   :  { %145 = dma.vmem_to_hbm [thread:$0]  %s140_s20, 256, %s258_s3, [#allocation4], %s205_s22, %s205_s22, %s206_s23  }
 0x218   :  { %200 = dma.done.wait [#allocation4], 256  }
 0x219   :  { %201 = vsyncadd [#allocation4], 4294967040 }
 0x21a   :  { %149 = vsyncpa [#allocation4], 1 }

</bundles_post_ra>
